<compile_context>
chip_gen: v7x
topology: tpu7x:2x2x1
jax: 0.10.0
libtpu: 0.0.40
codegen_flags: <defaults>
</compile_context>

<pallas_src>
import functools
import math

import jax
import jax.numpy as jnp
from jax.experimental import pallas as pl
from jax.experimental.pallas import tpu as pltpu

# ------------------ small BERT-like config ------------------
VOCAB = 100
HIDDEN = 32
N_HEADS = 2
HEAD_DIM = HIDDEN // N_HEADS
N_LAYERS = 2
INTERMEDIATE = 64
MAX_POS = 16
NUM_CLASSES = 3
PAD_CLASSES = 128          # lane-dense classifier output width (sliced back in JAX)
LN_EPS = 1e-12


# ------------------ in-kernel helpers ------------------
def _layernorm(x, g, b):
    mean = jnp.mean(x, axis=-1, keepdims=True)
    xc = x - mean
    var = jnp.mean(xc * xc, axis=-1, keepdims=True)
    return xc * jax.lax.rsqrt(var + LN_EPS) * g + b


def _gelu(x):
    # TODO(synk): HF BERT 'gelu' is the exact erf form; tanh approximation used here
    # (erf lowering in Mosaic is not guaranteed). Numerical difference is ~1e-3 level.
    return 0.5 * x * (1.0 + jnp.tanh(0.7978845608028654 * (x + 0.044715 * x * x * x)))


# ------------------ fused model kernel (single invocation) ------------------
def _model_kernel(emb_ref, mask_ref, lw_ref, wf_ref, lvec_ref, hw_ref, hvec_ref,
                  out_ref, *, B, S, nh, dh, L, I, P):
    H = nh * dh
    hvec = hvec_ref[...]                                       # (4, P)

    # Embedding LayerNorm (rows 2/3 of the head-vector slab are emb LN gamma/beta).
    h = _layernorm(emb_ref[...], hvec[2:3, :H], hvec[3:4, :H])  # (B*S, H)
    add_mask = mask_ref[...]                                    # (B, S) additive mask

    # Encoder layers: fully unrolled (L=2), all state carried as values (no HBM trips).
    for layer in range(L):
        lw = lw_ref[layer]                                      # (H, 4H+I)
        wf = wf_ref[layer]                                      # (I, H)
        lv = lvec_ref[layer]                                    # (8, 3H)
        wqkv = lw[:, :3 * H]
        wo = lw[:, 3 * H:4 * H]
        wi = lw[:, 4 * H:4 * H + I]
        bqkv = lv[0:1, :3 * H]
        bo = lv[1:2, :H]
        g1 = lv[2:3, :H]
        b1 = lv[3:4, :H]
        bi = lv[4:5, :I]
        bf = lv[5:6, :H]
        g2 = lv[6:7, :H]
        b2 = lv[7:8, :H]

        # Fused QKV projection (1/sqrt(dh) already folded into the Q portion).
        qkv = jnp.dot(h, wqkv, preferred_element_type=jnp.float32) + bqkv   # (B*S, 3H)

        # Attention for all (batch, head) pairs; context built as a value
        # (one full (B*S, H) slab, no masked sub-stores into scratch).
        ctx_rows = []
        for b in range(B):
            qkv_b = qkv[b * S:(b + 1) * S, :]                   # (S, 3H) row slab per batch
            m_b = add_mask[b:b + 1, :]                          # (1, S)
            heads = []
            for hd in range(nh):
                q = qkv_b[:, hd * dh:(hd + 1) * dh]
                k = qkv_b[:, H + hd * dh:H + (hd + 1) * dh]
                v = qkv_b[:, 2 * H + hd * dh:2 * H + (hd + 1) * dh]
                s = jnp.dot(q, k.T, preferred_element_type=jnp.float32) + m_b
                s = s - jnp.max(s, axis=-1, keepdims=True)
                p = jnp.exp(s)
                p = p * pl.reciprocal(jnp.sum(p, axis=-1, keepdims=True), approx=True)
                heads.append(jnp.dot(p, v, preferred_element_type=jnp.float32))
            ctx_rows.append(jnp.concatenate(heads, axis=-1))    # (S, H)
        ctx = jnp.concatenate(ctx_rows, axis=0)                 # (B*S, H)

        # Out-proj + residual + LN1, FFN(GELU) + residual + LN2.
        attn = jnp.dot(ctx, wo, preferred_element_type=jnp.float32) + bo
        x1 = _layernorm(attn + h, g1, b1)
        ff = _gelu(jnp.dot(x1, wi, preferred_element_type=jnp.float32) + bi)
        ff2 = jnp.dot(ff, wf, preferred_element_type=jnp.float32) + bf
        h = _layernorm(ff2 + x1, g2, b2)

    # Batched pooler (tanh on CLS tokens) + lane-dense classifier, single full store.
    hw = hw_ref[...]                                            # (H, H+P)
    cls = jnp.concatenate([h[b * S:b * S + 1, :] for b in range(B)], axis=0)  # (B, H)
    pooled = jnp.tanh(jnp.dot(cls, hw[:, :H], preferred_element_type=jnp.float32)
                      + hvec[0:1, :H])
    logits = jnp.dot(pooled, hw[:, H:H + P],
                     preferred_element_type=jnp.float32) + hvec[1:2, :P]
    out_ref[...] = logits.astype(out_ref.dtype)                 # (B, P) unmasked store


def _fused_bert_pallas(emb, add_mask, packed, *, B, S):
    lw, wf, lvec, hw, hvec = packed

    def full(arr):
        nd = arr.ndim
        return pl.BlockSpec(arr.shape, lambda l, _nd=nd: (0,) * _nd)

    kernel = functools.partial(_model_kernel, B=B, S=S, nh=N_HEADS, dh=HEAD_DIM,
                               L=N_LAYERS, I=INTERMEDIATE, P=PAD_CLASSES)
    return pl.pallas_call(
        kernel,
        out_shape=jax.ShapeDtypeStruct((B, PAD_CLASSES), jnp.float32),
        grid_spec=pltpu.PrefetchScalarGridSpec(
            num_scalar_prefetch=0,
            grid=(1,),
            in_specs=[full(emb), full(add_mask), full(lw), full(wf),
                      full(lvec), full(hw), full(hvec)],
            out_specs=pl.BlockSpec((B, PAD_CLASSES), lambda l: (0, 0)),
        ),
        compiler_params=pltpu.CompilerParams(dimension_semantics=("arbitrary",)),
    )(emb, add_mask, lw, wf, lvec, hw, hvec)


# ------------------ parameters ------------------
def init_params(base_key):
    cnt = [0]

    def nrm(shape, scale=0.02):
        k = jax.random.fold_in(base_key, cnt[0])
        cnt[0] += 1
        return (scale * jax.random.normal(k, shape)).astype(jnp.float32)

    def zeros(shape):
        return jnp.zeros(shape, jnp.float32)

    def ones(shape):
        return jnp.ones(shape, jnp.float32)

    params = dict(
        word_emb=nrm((VOCAB, HIDDEN)),
        pos_emb=nrm((MAX_POS, HIDDEN)),
        type_emb=nrm((2, HIDDEN)),
        emb_ln_g=ones((HIDDEN,)), emb_ln_b=zeros((HIDDEN,)),
        layers=[],
        pool_w=nrm((HIDDEN, HIDDEN)), pool_b=zeros((HIDDEN,)),
        cls_w=nrm((HIDDEN, NUM_CLASSES)), cls_b=zeros((NUM_CLASSES,)),
    )
    for _ in range(N_LAYERS):
        params["layers"].append(dict(
            wq=nrm((HIDDEN, HIDDEN)), bq=zeros((HIDDEN,)),
            wk=nrm((HIDDEN, HIDDEN)), bk=zeros((HIDDEN,)),
            wv=nrm((HIDDEN, HIDDEN)), bv=zeros((HIDDEN,)),
            wo=nrm((HIDDEN, HIDDEN)), bo=zeros((HIDDEN,)),
            ln1_g=ones((HIDDEN,)), ln1_b=zeros((HIDDEN,)),
            wi=nrm((HIDDEN, INTERMEDIATE)), bi=zeros((INTERMEDIATE,)),
            wf=nrm((INTERMEDIATE, HIDDEN)), bf=zeros((HIDDEN,)),
            ln2_g=ones((HIDDEN,)), ln2_b=zeros((HIDDEN,)),
        ))
    return params


def pack_params(params):
    """Pack all per-layer params into 3 slabs + 2 head slabs (7 kernel refs total)."""
    H, I, P = HIDDEN, INTERMEDIATE, PAD_CLASSES
    scale = 1.0 / math.sqrt(HEAD_DIM)

    def lrow(v):                                   # zero-padded (3H,) row
        return jnp.zeros((3 * H,), jnp.float32).at[:v.shape[0]].set(v)

    lw_list, wf_list, lvec_list = [], [], []
    for lp in params["layers"]:
        wqkv = jnp.concatenate([lp["wq"] * scale, lp["wk"], lp["wv"]], axis=1)  # (H, 3H)
        lw_list.append(jnp.concatenate([wqkv, lp["wo"], lp["wi"]], axis=1))     # (H, 4H+I)
        wf_list.append(lp["wf"])                                                # (I, H)
        bqkv = jnp.concatenate([lp["bq"] * scale, lp["bk"], lp["bv"]])          # (3H,)
        lvec_list.append(jnp.stack(
            [lrow(bqkv), lrow(lp["bo"]), lrow(lp["ln1_g"]), lrow(lp["ln1_b"]),
             lrow(lp["bi"]), lrow(lp["bf"]), lrow(lp["ln2_g"]), lrow(lp["ln2_b"])],
            axis=0))                                                            # (8, 3H)

    lw = jnp.stack(lw_list, axis=0)                # (L, H, 4H+I)
    wf = jnp.stack(wf_list, axis=0)                # (L, I, H)
    lvec = jnp.stack(lvec_list, axis=0)            # (L, 8, 3H)

    cls_w_pad = jnp.zeros((H, P), jnp.float32).at[:, :NUM_CLASSES].set(params["cls_w"])
    hw = jnp.concatenate([params["pool_w"], cls_w_pad], axis=1)                 # (H, H+P)

    def hrow(v):                                   # zero-padded (P,) row
        return jnp.zeros((P,), jnp.float32).at[:v.shape[0]].set(v)

    hvec = jnp.stack([hrow(params["pool_b"]), hrow(params["cls_b"]),
                      hrow(params["emb_ln_g"]), hrow(params["emb_ln_b"])], axis=0)  # (4, P)

    return lw, wf, lvec, hw, hvec


# ------------------ forward (naverModel) ------------------
@jax.jit
def naver_model_forward(ids, masks, params):
    B, S = ids.shape

    # BERT embeddings: gathers in plain JAX (irregular lookups); LN happens inside the kernel.
    we = params["word_emb"][ids]                     # (B, S, H)
    pe = params["pos_emb"][:S][None, :, :]           # (1, S, H)
    te = params["type_emb"][0][None, None, :]        # (1, 1, H) token_type_ids == 0
    emb = (we + pe + te).reshape(B * S, HIDDEN)

    # Additive attention mask: 0 where attended, -1e9 where masked.
    add_mask = (1.0 - masks.astype(jnp.float32)) * -1e9       # (B, S)

    packed = pack_params(params)
    logits_pad = _fused_bert_pallas(emb, add_mask, packed, B=B, S=S)   # (B, 128)

    # nn.Dropout(dr_rate) is identity at inference (eval mode).
    return logits_pad[:, :NUM_CLASSES]


if __name__ == "__main__":
    key = jax.random.PRNGKey(0)
    B, S = 2, 8
    ids = jax.random.randint(jax.random.fold_in(key, 1000), (B, S), 0, VOCAB,
                             dtype=jnp.int32)
    masks = jnp.ones((B, S), dtype=jnp.int32).at[1, 6:].set(0)   # pad last 2 tokens of row 1
    params = init_params(key)

    logits = naver_model_forward(ids, masks, params)
    jax.block_until_ready(logits)
    assert logits.shape == (B, NUM_CLASSES)
    assert bool(jnp.all(jnp.isfinite(logits)))
    print("KERNEL_OK")
</pallas_src>

<mosaic_0001>
module attributes {stable_mosaic.version = 11 : i64} {
  func.func @_model_kernel(%arg0: i32, %arg1: memref<16x32xf32, #tpu.memory_space<vmem>>, %arg2: memref<2x8xf32, #tpu.memory_space<vmem>>, %arg3: memref<2x32x192xf32, #tpu.memory_space<vmem>>, %arg4: memref<2x64x32xf32, #tpu.memory_space<vmem>>, %arg5: memref<2x8x96xf32, #tpu.memory_space<vmem>>, %arg6: memref<32x160xf32, #tpu.memory_space<vmem>>, %arg7: memref<4x128xf32, #tpu.memory_space<vmem>>, %arg8: memref<2x128xf32, #tpu.memory_space<vmem>>) attributes {dimension_semantics = [#tpu.dimension_semantics<arbitrary>], iteration_bounds = array<i64: 1>, scalar_prefetch = 0 : i64, scratch_operands = 0 : i64, tpu.core_type = #tpu.core_type<tc>, window_params = [{pipeline_mode = #tpu.pipeline_mode<synchronous>, transform_indices = @transform_0, window_bounds = array<i64: 16, 32>}, {pipeline_mode = #tpu.pipeline_mode<synchronous>, transform_indices = @transform_1, window_bounds = array<i64: 2, 8>}, {pipeline_mode = #tpu.pipeline_mode<synchronous>, transform_indices = @transform_2, window_bounds = array<i64: 2, 32, 192>}, {pipeline_mode = #tpu.pipeline_mode<synchronous>, transform_indices = @transform_3, window_bounds = array<i64: 2, 64, 32>}, {pipeline_mode = #tpu.pipeline_mode<synchronous>, transform_indices = @transform_4, window_bounds = array<i64: 2, 8, 96>}, {pipeline_mode = #tpu.pipeline_mode<synchronous>, transform_indices = @transform_5, window_bounds = array<i64: 32, 160>}, {pipeline_mode = #tpu.pipeline_mode<synchronous>, transform_indices = @transform_6, window_bounds = array<i64: 4, 128>}, {pipeline_mode = #tpu.pipeline_mode<synchronous>, transform_indices = @transform_7, window_bounds = array<i64: 2, 128>}]} {
    %c0 = arith.constant 0 : index
    %c0_0 = arith.constant 0 : index
    %0 = vector.load %arg7[%c0, %c0_0] : memref<4x128xf32, #tpu.memory_space<vmem>>, vector<4x128xf32>
    %c0_1 = arith.constant 0 : index
    %c0_2 = arith.constant 0 : index
    %1 = vector.load %arg1[%c0_1, %c0_2] : memref<16x32xf32, #tpu.memory_space<vmem>>, vector<16x32xf32>
    %2 = vector.extract_strided_slice %0 {offsets = [2, 0], sizes = [1, 32], strides = [1, 1]} : vector<4x128xf32> to vector<1x32xf32>
    %3 = vector.extract_strided_slice %0 {offsets = [3, 0], sizes = [1, 32], strides = [1, 1]} : vector<4x128xf32> to vector<1x32xf32>
    %cst = arith.constant dense<0.000000e+00> : vector<16xf32>
    %4 = vector.multi_reduction <add>, %1, %cst [1] : vector<16x32xf32> to vector<16xf32>
    %5 = vector.shape_cast %4 : vector<16xf32> to vector<16x1xf32>
    %cst_3 = arith.constant 3.200000e+01 : f32
    %6 = vector.broadcast %cst_3 : f32 to vector<16x1xf32>
    %7 = arith.divf %5, %6 : vector<16x1xf32>
    %8 = vector.broadcast %7 : vector<16x1xf32> to vector<16x32xf32>
    %9 = arith.subf %1, %8 : vector<16x32xf32>
    %10 = arith.mulf %9, %9 : vector<16x32xf32>
    %cst_4 = arith.constant dense<0.000000e+00> : vector<16xf32>
    %11 = vector.multi_reduction <add>, %10, %cst_4 [1] : vector<16x32xf32> to vector<16xf32>
    %12 = vector.shape_cast %11 : vector<16xf32> to vector<16x1xf32>
    %cst_5 = arith.constant 3.200000e+01 : f32
    %13 = vector.broadcast %cst_5 : f32 to vector<16x1xf32>
    %14 = arith.divf %12, %13 : vector<16x1xf32>
    %cst_6 = arith.constant 9.99999996E-13 : f32
    %15 = vector.broadcast %cst_6 : f32 to vector<16x1xf32>
    %16 = arith.addf %14, %15 : vector<16x1xf32>
    %17 = math.rsqrt %16 : vector<16x1xf32>
    %18 = vector.broadcast %17 : vector<16x1xf32> to vector<16x32xf32>
    %19 = arith.mulf %9, %18 : vector<16x32xf32>
    %20 = vector.broadcast %2 : vector<1x32xf32> to vector<16x32xf32>
    %21 = arith.mulf %19, %20 : vector<16x32xf32>
    %22 = vector.broadcast %3 : vector<1x32xf32> to vector<16x32xf32>
    %23 = arith.addf %21, %22 : vector<16x32xf32>
    %c0_7 = arith.constant 0 : index
    %c0_8 = arith.constant 0 : index
    %24 = vector.load %arg2[%c0_7, %c0_8] : memref<2x8xf32, #tpu.memory_space<vmem>>, vector<2x8xf32>
    %c0_9 = arith.constant 0 : index
    %c0_10 = arith.constant 0 : index
    %c0_11 = arith.constant 0 : index
    %25 = vector.load %arg3[%c0_9, %c0_10, %c0_11] : memref<2x32x192xf32, #tpu.memory_space<vmem>>, vector<1x32x192xf32>
    %26 = vector.shape_cast %25 : vector<1x32x192xf32> to vector<32x192xf32>
    %c0_12 = arith.constant 0 : index
    %c0_13 = arith.constant 0 : index
    %c0_14 = arith.constant 0 : index
    %27 = vector.load %arg4[%c0_12, %c0_13, %c0_14] : memref<2x64x32xf32, #tpu.memory_space<vmem>>, vector<1x64x32xf32>
    %28 = vector.shape_cast %27 : vector<1x64x32xf32> to vector<64x32xf32>
    %c0_15 = arith.constant 0 : index
    %c0_16 = arith.constant 0 : index
    %c0_17 = arith.constant 0 : index
    %29 = vector.load %arg5[%c0_15, %c0_16, %c0_17] : memref<2x8x96xf32, #tpu.memory_space<vmem>>, vector<1x8x96xf32>
    %30 = vector.shape_cast %29 : vector<1x8x96xf32> to vector<8x96xf32>
    %31 = vector.extract_strided_slice %26 {offsets = [0, 0], sizes = [32, 96], strides = [1, 1]} : vector<32x192xf32> to vector<32x96xf32>
    %32 = vector.extract_strided_slice %26 {offsets = [0, 96], sizes = [32, 32], strides = [1, 1]} : vector<32x192xf32> to vector<32x32xf32>
    %33 = vector.extract_strided_slice %26 {offsets = [0, 128], sizes = [32, 64], strides = [1, 1]} : vector<32x192xf32> to vector<32x64xf32>
    %34 = vector.extract_strided_slice %30 {offsets = [0, 0], sizes = [1, 96], strides = [1, 1]} : vector<8x96xf32> to vector<1x96xf32>
    %35 = vector.extract_strided_slice %30 {offsets = [1, 0], sizes = [1, 32], strides = [1, 1]} : vector<8x96xf32> to vector<1x32xf32>
    %36 = vector.extract_strided_slice %30 {offsets = [2, 0], sizes = [1, 32], strides = [1, 1]} : vector<8x96xf32> to vector<1x32xf32>
    %37 = vector.extract_strided_slice %30 {offsets = [3, 0], sizes = [1, 32], strides = [1, 1]} : vector<8x96xf32> to vector<1x32xf32>
    %38 = vector.extract_strided_slice %30 {offsets = [4, 0], sizes = [1, 64], strides = [1, 1]} : vector<8x96xf32> to vector<1x64xf32>
    %39 = vector.extract_strided_slice %30 {offsets = [5, 0], sizes = [1, 32], strides = [1, 1]} : vector<8x96xf32> to vector<1x32xf32>
    %40 = vector.extract_strided_slice %30 {offsets = [6, 0], sizes = [1, 32], strides = [1, 1]} : vector<8x96xf32> to vector<1x32xf32>
    %41 = vector.extract_strided_slice %30 {offsets = [7, 0], sizes = [1, 32], strides = [1, 1]} : vector<8x96xf32> to vector<1x32xf32>
    %cst_18 = arith.constant dense<0.000000e+00> : vector<16x96xf32>
    %42 = tpu.matmul %23, %31, %cst_18 {dimension_numbers = #tpu.dot_dimension_numbers<[1], [0], [0], [1], [0, 0, 1, 1], [], []>} : vector<16x32xf32>, vector<32x96xf32>, vector<16x96xf32> -> vector<16x96xf32>
    %43 = vector.broadcast %34 : vector<1x96xf32> to vector<16x96xf32>
    %44 = arith.addf %42, %43 : vector<16x96xf32>
    %45 = vector.extract_strided_slice %44 {offsets = [0, 0], sizes = [8, 96], strides = [1, 1]} : vector<16x96xf32> to vector<8x96xf32>
    %46 = vector.extract_strided_slice %24 {offsets = [0, 0], sizes = [1, 8], strides = [1, 1]} : vector<2x8xf32> to vector<1x8xf32>
    %47 = vector.extract_strided_slice %45 {offsets = [0, 0], sizes = [8, 16], strides = [1, 1]} : vector<8x96xf32> to vector<8x16xf32>
    %48 = vector.extract_strided_slice %45 {offsets = [0, 32], sizes = [8, 16], strides = [1, 1]} : vector<8x96xf32> to vector<8x16xf32>
    %49 = vector.extract_strided_slice %45 {offsets = [0, 64], sizes = [8, 16], strides = [1, 1]} : vector<8x96xf32> to vector<8x16xf32>
    %50 = tpu.transpose %48, [1, 0] : vector<8x16xf32> -> vector<16x8xf32>
    %cst_19 = arith.constant dense<0.000000e+00> : vector<8x8xf32>
    %51 = tpu.matmul %47, %50, %cst_19 {dimension_numbers = #tpu.dot_dimension_numbers<[1], [0], [0], [1], [0, 0, 1, 1], [], []>} : vector<8x16xf32>, vector<16x8xf32>, vector<8x8xf32> -> vector<8x8xf32>
    %52 = vector.broadcast %46 : vector<1x8xf32> to vector<8x8xf32>
    %53 = arith.addf %51, %52 : vector<8x8xf32>
    %cst_20 = arith.constant dense<0xFF800000> : vector<8xf32>
    %54 = vector.multi_reduction <maximumf>, %53, %cst_20 [1] : vector<8x8xf32> to vector<8xf32>
    %55 = vector.shape_cast %54 : vector<8xf32> to vector<8x1xf32>
    %56 = vector.broadcast %55 : vector<8x1xf32> to vector<8x8xf32>
    %57 = arith.subf %53, %56 : vector<8x8xf32>
    %58 = math.exp %57 : vector<8x8xf32>
    %cst_21 = arith.constant dense<0.000000e+00> : vector<8xf32>
    %59 = vector.multi_reduction <add>, %58, %cst_21 [1] : vector<8x8xf32> to vector<8xf32>
    %60 = vector.shape_cast %59 : vector<8xf32> to vector<8x1xf32>
    %61 = tpu.reciprocal %60 {approx = true} : vector<8x1xf32> -> vector<8x1xf32>
    %62 = vector.broadcast %61 : vector<8x1xf32> to vector<8x8xf32>
    %63 = arith.mulf %58, %62 : vector<8x8xf32>
    %cst_22 = arith.constant dense<0.000000e+00> : vector<8x16xf32>
    %64 = tpu.matmul %63, %49, %cst_22 {dimension_numbers = #tpu.dot_dimension_numbers<[1], [0], [0], [1], [0, 0, 1, 1], [], []>} : vector<8x8xf32>, vector<8x16xf32>, vector<8x16xf32> -> vector<8x16xf32>
    %65 = vector.extract_strided_slice %45 {offsets = [0, 16], sizes = [8, 16], strides = [1, 1]} : vector<8x96xf32> to vector<8x16xf32>
    %66 = vector.extract_strided_slice %45 {offsets = [0, 48], sizes = [8, 16], strides = [1, 1]} : vector<8x96xf32> to vector<8x16xf32>
    %67 = vector.extract_strided_slice %45 {offsets = [0, 80], sizes = [8, 16], strides = [1, 1]} : vector<8x96xf32> to vector<8x16xf32>
    %68 = tpu.transpose %66, [1, 0] : vector<8x16xf32> -> vector<16x8xf32>
    %cst_23 = arith.constant dense<0.000000e+00> : vector<8x8xf32>
    %69 = tpu.matmul %65, %68, %cst_23 {dimension_numbers = #tpu.dot_dimension_numbers<[1], [0], [0], [1], [0, 0, 1, 1], [], []>} : vector<8x16xf32>, vector<16x8xf32>, vector<8x8xf32> -> vector<8x8xf32>
    %70 = vector.broadcast %46 : vector<1x8xf32> to vector<8x8xf32>
    %71 = arith.addf %69, %70 : vector<8x8xf32>
    %cst_24 = arith.constant dense<0xFF800000> : vector<8xf32>
    %72 = vector.multi_reduction <maximumf>, %71, %cst_24 [1] : vector<8x8xf32> to vector<8xf32>
    %73 = vector.shape_cast %72 : vector<8xf32> to vector<8x1xf32>
    %74 = vector.broadcast %73 : vector<8x1xf32> to vector<8x8xf32>
    %75 = arith.subf %71, %74 : vector<8x8xf32>
    %76 = math.exp %75 : vector<8x8xf32>
    %cst_25 = arith.constant dense<0.000000e+00> : vector<8xf32>
    %77 = vector.multi_reduction <add>, %76, %cst_25 [1] : vector<8x8xf32> to vector<8xf32>
    %78 = vector.shape_cast %77 : vector<8xf32> to vector<8x1xf32>
    %79 = tpu.reciprocal %78 {approx = true} : vector<8x1xf32> -> vector<8x1xf32>
    %80 = vector.broadcast %79 : vector<8x1xf32> to vector<8x8xf32>
    %81 = arith.mulf %76, %80 : vector<8x8xf32>
    %cst_26 = arith.constant dense<0.000000e+00> : vector<8x16xf32>
    %82 = tpu.matmul %81, %67, %cst_26 {dimension_numbers = #tpu.dot_dimension_numbers<[1], [0], [0], [1], [0, 0, 1, 1], [], []>} : vector<8x8xf32>, vector<8x16xf32>, vector<8x16xf32> -> vector<8x16xf32>
    %83 = tpu.concatenate %64, %82 in 1 : vector<8x16xf32>, vector<8x16xf32> -> vector<8x32xf32>
    %84 = vector.extract_strided_slice %44 {offsets = [8, 0], sizes = [8, 96], strides = [1, 1]} : vector<16x96xf32> to vector<8x96xf32>
    %85 = vector.extract_strided_slice %24 {offsets = [1, 0], sizes = [1, 8], strides = [1, 1]} : vector<2x8xf32> to vector<1x8xf32>
    %86 = vector.extract_strided_slice %84 {offsets = [0, 0], sizes = [8, 16], strides = [1, 1]} : vector<8x96xf32> to vector<8x16xf32>
    %87 = vector.extract_strided_slice %84 {offsets = [0, 32], sizes = [8, 16], strides = [1, 1]} : vector<8x96xf32> to vector<8x16xf32>
    %88 = vector.extract_strided_slice %84 {offsets = [0, 64], sizes = [8, 16], strides = [1, 1]} : vector<8x96xf32> to vector<8x16xf32>
    %89 = tpu.transpose %87, [1, 0] : vector<8x16xf32> -> vector<16x8xf32>
    %cst_27 = arith.constant dense<0.000000e+00> : vector<8x8xf32>
    %90 = tpu.matmul %86, %89, %cst_27 {dimension_numbers = #tpu.dot_dimension_numbers<[1], [0], [0], [1], [0, 0, 1, 1], [], []>} : vector<8x16xf32>, vector<16x8xf32>, vector<8x8xf32> -> vector<8x8xf32>
    %91 = vector.broadcast %85 : vector<1x8xf32> to vector<8x8xf32>
    %92 = arith.addf %90, %91 : vector<8x8xf32>
    %cst_28 = arith.constant dense<0xFF800000> : vector<8xf32>
    %93 = vector.multi_reduction <maximumf>, %92, %cst_28 [1] : vector<8x8xf32> to vector<8xf32>
    %94 = vector.shape_cast %93 : vector<8xf32> to vector<8x1xf32>
    %95 = vector.broadcast %94 : vector<8x1xf32> to vector<8x8xf32>
    %96 = arith.subf %92, %95 : vector<8x8xf32>
    %97 = math.exp %96 : vector<8x8xf32>
    %cst_29 = arith.constant dense<0.000000e+00> : vector<8xf32>
    %98 = vector.multi_reduction <add>, %97, %cst_29 [1] : vector<8x8xf32> to vector<8xf32>
    %99 = vector.shape_cast %98 : vector<8xf32> to vector<8x1xf32>
    %100 = tpu.reciprocal %99 {approx = true} : vector<8x1xf32> -> vector<8x1xf32>
    %101 = vector.broadcast %100 : vector<8x1xf32> to vector<8x8xf32>
    %102 = arith.mulf %97, %101 : vector<8x8xf32>
    %cst_30 = arith.constant dense<0.000000e+00> : vector<8x16xf32>
    %103 = tpu.matmul %102, %88, %cst_30 {dimension_numbers = #tpu.dot_dimension_numbers<[1], [0], [0], [1], [0, 0, 1, 1], [], []>} : vector<8x8xf32>, vector<8x16xf32>, vector<8x16xf32> -> vector<8x16xf32>
    %104 = vector.extract_strided_slice %84 {offsets = [0, 16], sizes = [8, 16], strides = [1, 1]} : vector<8x96xf32> to vector<8x16xf32>
    %105 = vector.extract_strided_slice %84 {offsets = [0, 48], sizes = [8, 16], strides = [1, 1]} : vector<8x96xf32> to vector<8x16xf32>
    %106 = vector.extract_strided_slice %84 {offsets = [0, 80], sizes = [8, 16], strides = [1, 1]} : vector<8x96xf32> to vector<8x16xf32>
    %107 = tpu.transpose %105, [1, 0] : vector<8x16xf32> -> vector<16x8xf32>
    %cst_31 = arith.constant dense<0.000000e+00> : vector<8x8xf32>
    %108 = tpu.matmul %104, %107, %cst_31 {dimension_numbers = #tpu.dot_dimension_numbers<[1], [0], [0], [1], [0, 0, 1, 1], [], []>} : vector<8x16xf32>, vector<16x8xf32>, vector<8x8xf32> -> vector<8x8xf32>
    %109 = vector.broadcast %85 : vector<1x8xf32> to vector<8x8xf32>
    %110 = arith.addf %108, %109 : vector<8x8xf32>
    %cst_32 = arith.constant dense<0xFF800000> : vector<8xf32>
    %111 = vector.multi_reduction <maximumf>, %110, %cst_32 [1] : vector<8x8xf32> to vector<8xf32>
    %112 = vector.shape_cast %111 : vector<8xf32> to vector<8x1xf32>
    %113 = vector.broadcast %112 : vector<8x1xf32> to vector<8x8xf32>
    %114 = arith.subf %110, %113 : vector<8x8xf32>
    %115 = math.exp %114 : vector<8x8xf32>
    %cst_33 = arith.constant dense<0.000000e+00> : vector<8xf32>
    %116 = vector.multi_reduction <add>, %115, %cst_33 [1] : vector<8x8xf32> to vector<8xf32>
    %117 = vector.shape_cast %116 : vector<8xf32> to vector<8x1xf32>
    %118 = tpu.reciprocal %117 {approx = true} : vector<8x1xf32> -> vector<8x1xf32>
    %119 = vector.broadcast %118 : vector<8x1xf32> to vector<8x8xf32>
    %120 = arith.mulf %115, %119 : vector<8x8xf32>
    %cst_34 = arith.constant dense<0.000000e+00> : vector<8x16xf32>
    %121 = tpu.matmul %120, %106, %cst_34 {dimension_numbers = #tpu.dot_dimension_numbers<[1], [0], [0], [1], [0, 0, 1, 1], [], []>} : vector<8x8xf32>, vector<8x16xf32>, vector<8x16xf32> -> vector<8x16xf32>
    %122 = tpu.concatenate %103, %121 in 1 : vector<8x16xf32>, vector<8x16xf32> -> vector<8x32xf32>
    %123 = tpu.concatenate %83, %122 in 0 : vector<8x32xf32>, vector<8x32xf32> -> vector<16x32xf32>
    %cst_35 = arith.constant dense<0.000000e+00> : vector<16x32xf32>
    %124 = tpu.matmul %123, %32, %cst_35 {dimension_numbers = #tpu.dot_dimension_numbers<[1], [0], [0], [1], [0, 0, 1, 1], [], []>} : vector<16x32xf32>, vector<32x32xf32>, vector<16x32xf32> -> vector<16x32xf32>
    %125 = vector.broadcast %35 : vector<1x32xf32> to vector<16x32xf32>
    %126 = arith.addf %124, %125 : vector<16x32xf32>
    %127 = arith.addf %126, %23 : vector<16x32xf32>
    %cst_36 = arith.constant dense<0.000000e+00> : vector<16xf32>
    %128 = vector.multi_reduction <add>, %127, %cst_36 [1] : vector<16x32xf32> to vector<16xf32>
    %129 = vector.shape_cast %128 : vector<16xf32> to vector<16x1xf32>
    %cst_37 = arith.constant 3.200000e+01 : f32
    %130 = vector.broadcast %cst_37 : f32 to vector<16x1xf32>
    %131 = arith.divf %129, %130 : vector<16x1xf32>
    %132 = vector.broadcast %131 : vector<16x1xf32> to vector<16x32xf32>
    %133 = arith.subf %127, %132 : vector<16x32xf32>
    %134 = arith.mulf %133, %133 : vector<16x32xf32>
    %cst_38 = arith.constant dense<0.000000e+00> : vector<16xf32>
    %135 = vector.multi_reduction <add>, %134, %cst_38 [1] : vector<16x32xf32> to vector<16xf32>
    %136 = vector.shape_cast %135 : vector<16xf32> to vector<16x1xf32>
    %cst_39 = arith.constant 3.200000e+01 : f32
    %137 = vector.broadcast %cst_39 : f32 to vector<16x1xf32>
    %138 = arith.divf %136, %137 : vector<16x1xf32>
    %cst_40 = arith.constant 9.99999996E-13 : f32
    %139 = vector.broadcast %cst_40 : f32 to vector<16x1xf32>
    %140 = arith.addf %138, %139 : vector<16x1xf32>
    %141 = math.rsqrt %140 : vector<16x1xf32>
    %142 = vector.broadcast %141 : vector<16x1xf32> to vector<16x32xf32>
    %143 = arith.mulf %133, %142 : vector<16x32xf32>
    %144 = vector.broadcast %36 : vector<1x32xf32> to vector<16x32xf32>
    %145 = arith.mulf %143, %144 : vector<16x32xf32>
    %146 = vector.broadcast %37 : vector<1x32xf32> to vector<16x32xf32>
    %147 = arith.addf %145, %146 : vector<16x32xf32>
    %cst_41 = arith.constant dense<0.000000e+00> : vector<16x64xf32>
    %148 = tpu.matmul %147, %33, %cst_41 {dimension_numbers = #tpu.dot_dimension_numbers<[1], [0], [0], [1], [0, 0, 1, 1], [], []>} : vector<16x32xf32>, vector<32x64xf32>, vector<16x64xf32> -> vector<16x64xf32>
    %149 = vector.broadcast %38 : vector<1x64xf32> to vector<16x64xf32>
    %150 = arith.addf %148, %149 : vector<16x64xf32>
    %cst_42 = arith.constant 5.000000e-01 : f32
    %151 = vector.broadcast %cst_42 : f32 to vector<16x64xf32>
    %152 = arith.mulf %151, %150 : vector<16x64xf32>
    %cst_43 = arith.constant 4.471500e-02 : f32
    %153 = vector.broadcast %cst_43 : f32 to vector<16x64xf32>
    %154 = arith.mulf %153, %150 : vector<16x64xf32>
    %155 = arith.mulf %154, %150 : vector<16x64xf32>
    %156 = arith.mulf %155, %150 : vector<16x64xf32>
    %157 = arith.addf %150, %156 : vector<16x64xf32>
    %cst_44 = arith.constant 0.797884583 : f32
    %158 = vector.broadcast %cst_44 : f32 to vector<16x64xf32>
    %159 = arith.mulf %158, %157 : vector<16x64xf32>
    %160 = math.tanh %159 : vector<16x64xf32>
    %cst_45 = arith.constant 1.000000e+00 : f32
    %161 = vector.broadcast %cst_45 : f32 to vector<16x64xf32>
    %162 = arith.addf %161, %160 : vector<16x64xf32>
    %163 = arith.mulf %152, %162 : vector<16x64xf32>
    %cst_46 = arith.constant dense<0.000000e+00> : vector<16x32xf32>
    %164 = tpu.matmul %163, %28, %cst_46 {dimension_numbers = #tpu.dot_dimension_numbers<[1], [0], [0], [1], [0, 0, 1, 1], [], []>} : vector<16x64xf32>, vector<64x32xf32>, vector<16x32xf32> -> vector<16x32xf32>
    %165 = vector.broadcast %39 : vector<1x32xf32> to vector<16x32xf32>
    %166 = arith.addf %164, %165 : vector<16x32xf32>
    %167 = arith.addf %166, %147 : vector<16x32xf32>
    %cst_47 = arith.constant dense<0.000000e+00> : vector<16xf32>
    %168 = vector.multi_reduction <add>, %167, %cst_47 [1] : vector<16x32xf32> to vector<16xf32>
    %169 = vector.shape_cast %168 : vector<16xf32> to vector<16x1xf32>
    %cst_48 = arith.constant 3.200000e+01 : f32
    %170 = vector.broadcast %cst_48 : f32 to vector<16x1xf32>
    %171 = arith.divf %169, %170 : vector<16x1xf32>
    %172 = vector.broadcast %171 : vector<16x1xf32> to vector<16x32xf32>
    %173 = arith.subf %167, %172 : vector<16x32xf32>
    %174 = arith.mulf %173, %173 : vector<16x32xf32>
    %cst_49 = arith.constant dense<0.000000e+00> : vector<16xf32>
    %175 = vector.multi_reduction <add>, %174, %cst_49 [1] : vector<16x32xf32> to vector<16xf32>
    %176 = vector.shape_cast %175 : vector<16xf32> to vector<16x1xf32>
    %cst_50 = arith.constant 3.200000e+01 : f32
    %177 = vector.broadcast %cst_50 : f32 to vector<16x1xf32>
    %178 = arith.divf %176, %177 : vector<16x1xf32>
    %cst_51 = arith.constant 9.99999996E-13 : f32
    %179 = vector.broadcast %cst_51 : f32 to vector<16x1xf32>
    %180 = arith.addf %178, %179 : vector<16x1xf32>
    %181 = math.rsqrt %180 : vector<16x1xf32>
    %182 = vector.broadcast %181 : vector<16x1xf32> to vector<16x32xf32>
    %183 = arith.mulf %173, %182 : vector<16x32xf32>
    %184 = vector.broadcast %40 : vector<1x32xf32> to vector<16x32xf32>
    %185 = arith.mulf %183, %184 : vector<16x32xf32>
    %186 = vector.broadcast %41 : vector<1x32xf32> to vector<16x32xf32>
    %187 = arith.addf %185, %186 : vector<16x32xf32>
    %c1 = arith.constant 1 : index
    %c0_52 = arith.constant 0 : index
    %c0_53 = arith.constant 0 : index
    %188 = vector.load %arg3[%c1, %c0_52, %c0_53] : memref<2x32x192xf32, #tpu.memory_space<vmem>>, vector<1x32x192xf32>
    %189 = vector.shape_cast %188 : vector<1x32x192xf32> to vector<32x192xf32>
    %c1_54 = arith.constant 1 : index
    %c0_55 = arith.constant 0 : index
    %c0_56 = arith.constant 0 : index
    %190 = vector.load %arg4[%c1_54, %c0_55, %c0_56] : memref<2x64x32xf32, #tpu.memory_space<vmem>>, vector<1x64x32xf32>
    %191 = vector.shape_cast %190 : vector<1x64x32xf32> to vector<64x32xf32>
    %c1_57 = arith.constant 1 : index
    %c0_58 = arith.constant 0 : index
    %c0_59 = arith.constant 0 : index
    %192 = vector.load %arg5[%c1_57, %c0_58, %c0_59] : memref<2x8x96xf32, #tpu.memory_space<vmem>>, vector<1x8x96xf32>
    %193 = vector.shape_cast %192 : vector<1x8x96xf32> to vector<8x96xf32>
    %194 = vector.extract_strided_slice %189 {offsets = [0, 0], sizes = [32, 96], strides = [1, 1]} : vector<32x192xf32> to vector<32x96xf32>
    %195 = vector.extract_strided_slice %189 {offsets = [0, 96], sizes = [32, 32], strides = [1, 1]} : vector<32x192xf32> to vector<32x32xf32>
    %196 = vector.extract_strided_slice %189 {offsets = [0, 128], sizes = [32, 64], strides = [1, 1]} : vector<32x192xf32> to vector<32x64xf32>
    %197 = vector.extract_strided_slice %193 {offsets = [0, 0], sizes = [1, 96], strides = [1, 1]} : vector<8x96xf32> to vector<1x96xf32>
    %198 = vector.extract_strided_slice %193 {offsets = [1, 0], sizes = [1, 32], strides = [1, 1]} : vector<8x96xf32> to vector<1x32xf32>
    %199 = vector.extract_strided_slice %193 {offsets = [2, 0], sizes = [1, 32], strides = [1, 1]} : vector<8x96xf32> to vector<1x32xf32>
    %200 = vector.extract_strided_slice %193 {offsets = [3, 0], sizes = [1, 32], strides = [1, 1]} : vector<8x96xf32> to vector<1x32xf32>
    %201 = vector.extract_strided_slice %193 {offsets = [4, 0], sizes = [1, 64], strides = [1, 1]} : vector<8x96xf32> to vector<1x64xf32>
    %202 = vector.extract_strided_slice %193 {offsets = [5, 0], sizes = [1, 32], strides = [1, 1]} : vector<8x96xf32> to vector<1x32xf32>
    %203 = vector.extract_strided_slice %193 {offsets = [6, 0], sizes = [1, 32], strides = [1, 1]} : vector<8x96xf32> to vector<1x32xf32>
    %204 = vector.extract_strided_slice %193 {offsets = [7, 0], sizes = [1, 32], strides = [1, 1]} : vector<8x96xf32> to vector<1x32xf32>
    %cst_60 = arith.constant dense<0.000000e+00> : vector<16x96xf32>
    %205 = tpu.matmul %187, %194, %cst_60 {dimension_numbers = #tpu.dot_dimension_numbers<[1], [0], [0], [1], [0, 0, 1, 1], [], []>} : vector<16x32xf32>, vector<32x96xf32>, vector<16x96xf32> -> vector<16x96xf32>
    %206 = vector.broadcast %197 : vector<1x96xf32> to vector<16x96xf32>
    %207 = arith.addf %205, %206 : vector<16x96xf32>
    %208 = vector.extract_strided_slice %207 {offsets = [0, 0], sizes = [8, 96], strides = [1, 1]} : vector<16x96xf32> to vector<8x96xf32>
    %209 = vector.extract_strided_slice %24 {offsets = [0, 0], sizes = [1, 8], strides = [1, 1]} : vector<2x8xf32> to vector<1x8xf32>
    %210 = vector.extract_strided_slice %208 {offsets = [0, 0], sizes = [8, 16], strides = [1, 1]} : vector<8x96xf32> to vector<8x16xf32>
    %211 = vector.extract_strided_slice %208 {offsets = [0, 32], sizes = [8, 16], strides = [1, 1]} : vector<8x96xf32> to vector<8x16xf32>
    %212 = vector.extract_strided_slice %208 {offsets = [0, 64], sizes = [8, 16], strides = [1, 1]} : vector<8x96xf32> to vector<8x16xf32>
    %213 = tpu.transpose %211, [1, 0] : vector<8x16xf32> -> vector<16x8xf32>
    %cst_61 = arith.constant dense<0.000000e+00> : vector<8x8xf32>
    %214 = tpu.matmul %210, %213, %cst_61 {dimension_numbers = #tpu.dot_dimension_numbers<[1], [0], [0], [1], [0, 0, 1, 1], [], []>} : vector<8x16xf32>, vector<16x8xf32>, vector<8x8xf32> -> vector<8x8xf32>
    %215 = vector.broadcast %209 : vector<1x8xf32> to vector<8x8xf32>
    %216 = arith.addf %214, %215 : vector<8x8xf32>
    %cst_62 = arith.constant dense<0xFF800000> : vector<8xf32>
    %217 = vector.multi_reduction <maximumf>, %216, %cst_62 [1] : vector<8x8xf32> to vector<8xf32>
    %218 = vector.shape_cast %217 : vector<8xf32> to vector<8x1xf32>
    %219 = vector.broadcast %218 : vector<8x1xf32> to vector<8x8xf32>
    %220 = arith.subf %216, %219 : vector<8x8xf32>
    %221 = math.exp %220 : vector<8x8xf32>
    %cst_63 = arith.constant dense<0.000000e+00> : vector<8xf32>
    %222 = vector.multi_reduction <add>, %221, %cst_63 [1] : vector<8x8xf32> to vector<8xf32>
    %223 = vector.shape_cast %222 : vector<8xf32> to vector<8x1xf32>
    %224 = tpu.reciprocal %223 {approx = true} : vector<8x1xf32> -> vector<8x1xf32>
    %225 = vector.broadcast %224 : vector<8x1xf32> to vector<8x8xf32>
    %226 = arith.mulf %221, %225 : vector<8x8xf32>
    %cst_64 = arith.constant dense<0.000000e+00> : vector<8x16xf32>
    %227 = tpu.matmul %226, %212, %cst_64 {dimension_numbers = #tpu.dot_dimension_numbers<[1], [0], [0], [1], [0, 0, 1, 1], [], []>} : vector<8x8xf32>, vector<8x16xf32>, vector<8x16xf32> -> vector<8x16xf32>
    %228 = vector.extract_strided_slice %208 {offsets = [0, 16], sizes = [8, 16], strides = [1, 1]} : vector<8x96xf32> to vector<8x16xf32>
    %229 = vector.extract_strided_slice %208 {offsets = [0, 48], sizes = [8, 16], strides = [1, 1]} : vector<8x96xf32> to vector<8x16xf32>
    %230 = vector.extract_strided_slice %208 {offsets = [0, 80], sizes = [8, 16], strides = [1, 1]} : vector<8x96xf32> to vector<8x16xf32>
    %231 = tpu.transpose %229, [1, 0] : vector<8x16xf32> -> vector<16x8xf32>
    %cst_65 = arith.constant dense<0.000000e+00> : vector<8x8xf32>
    %232 = tpu.matmul %228, %231, %cst_65 {dimension_numbers = #tpu.dot_dimension_numbers<[1], [0], [0], [1], [0, 0, 1, 1], [], []>} : vector<8x16xf32>, vector<16x8xf32>, vector<8x8xf32> -> vector<8x8xf32>
    %233 = vector.broadcast %209 : vector<1x8xf32> to vector<8x8xf32>
    %234 = arith.addf %232, %233 : vector<8x8xf32>
    %cst_66 = arith.constant dense<0xFF800000> : vector<8xf32>
    %235 = vector.multi_reduction <maximumf>, %234, %cst_66 [1] : vector<8x8xf32> to vector<8xf32>
    %236 = vector.shape_cast %235 : vector<8xf32> to vector<8x1xf32>
    %237 = vector.broadcast %236 : vector<8x1xf32> to vector<8x8xf32>
    %238 = arith.subf %234, %237 : vector<8x8xf32>
    %239 = math.exp %238 : vector<8x8xf32>
    %cst_67 = arith.constant dense<0.000000e+00> : vector<8xf32>
    %240 = vector.multi_reduction <add>, %239, %cst_67 [1] : vector<8x8xf32> to vector<8xf32>
    %241 = vector.shape_cast %240 : vector<8xf32> to vector<8x1xf32>
    %242 = tpu.reciprocal %241 {approx = true} : vector<8x1xf32> -> vector<8x1xf32>
    %243 = vector.broadcast %242 : vector<8x1xf32> to vector<8x8xf32>
    %244 = arith.mulf %239, %243 : vector<8x8xf32>
    %cst_68 = arith.constant dense<0.000000e+00> : vector<8x16xf32>
    %245 = tpu.matmul %244, %230, %cst_68 {dimension_numbers = #tpu.dot_dimension_numbers<[1], [0], [0], [1], [0, 0, 1, 1], [], []>} : vector<8x8xf32>, vector<8x16xf32>, vector<8x16xf32> -> vector<8x16xf32>
    %246 = tpu.concatenate %227, %245 in 1 : vector<8x16xf32>, vector<8x16xf32> -> vector<8x32xf32>
    %247 = vector.extract_strided_slice %207 {offsets = [8, 0], sizes = [8, 96], strides = [1, 1]} : vector<16x96xf32> to vector<8x96xf32>
    %248 = vector.extract_strided_slice %24 {offsets = [1, 0], sizes = [1, 8], strides = [1, 1]} : vector<2x8xf32> to vector<1x8xf32>
    %249 = vector.extract_strided_slice %247 {offsets = [0, 0], sizes = [8, 16], strides = [1, 1]} : vector<8x96xf32> to vector<8x16xf32>
    %250 = vector.extract_strided_slice %247 {offsets = [0, 32], sizes = [8, 16], strides = [1, 1]} : vector<8x96xf32> to vector<8x16xf32>
    %251 = vector.extract_strided_slice %247 {offsets = [0, 64], sizes = [8, 16], strides = [1, 1]} : vector<8x96xf32> to vector<8x16xf32>
    %252 = tpu.transpose %250, [1, 0] : vector<8x16xf32> -> vector<16x8xf32>
    %cst_69 = arith.constant dense<0.000000e+00> : vector<8x8xf32>
    %253 = tpu.matmul %249, %252, %cst_69 {dimension_numbers = #tpu.dot_dimension_numbers<[1], [0], [0], [1], [0, 0, 1, 1], [], []>} : vector<8x16xf32>, vector<16x8xf32>, vector<8x8xf32> -> vector<8x8xf32>
    %254 = vector.broadcast %248 : vector<1x8xf32> to vector<8x8xf32>
    %255 = arith.addf %253, %254 : vector<8x8xf32>
    %cst_70 = arith.constant dense<0xFF800000> : vector<8xf32>
    %256 = vector.multi_reduction <maximumf>, %255, %cst_70 [1] : vector<8x8xf32> to vector<8xf32>
    %257 = vector.shape_cast %256 : vector<8xf32> to vector<8x1xf32>
    %258 = vector.broadcast %257 : vector<8x1xf32> to vector<8x8xf32>
    %259 = arith.subf %255, %258 : vector<8x8xf32>
    %260 = math.exp %259 : vector<8x8xf32>
    %cst_71 = arith.constant dense<0.000000e+00> : vector<8xf32>
    %261 = vector.multi_reduction <add>, %260, %cst_71 [1] : vector<8x8xf32> to vector<8xf32>
    %262 = vector.shape_cast %261 : vector<8xf32> to vector<8x1xf32>
    %263 = tpu.reciprocal %262 {approx = true} : vector<8x1xf32> -> vector<8x1xf32>
    %264 = vector.broadcast %263 : vector<8x1xf32> to vector<8x8xf32>
    %265 = arith.mulf %260, %264 : vector<8x8xf32>
    %cst_72 = arith.constant dense<0.000000e+00> : vector<8x16xf32>
    %266 = tpu.matmul %265, %251, %cst_72 {dimension_numbers = #tpu.dot_dimension_numbers<[1], [0], [0], [1], [0, 0, 1, 1], [], []>} : vector<8x8xf32>, vector<8x16xf32>, vector<8x16xf32> -> vector<8x16xf32>
    %267 = vector.extract_strided_slice %247 {offsets = [0, 16], sizes = [8, 16], strides = [1, 1]} : vector<8x96xf32> to vector<8x16xf32>
    %268 = vector.extract_strided_slice %247 {offsets = [0, 48], sizes = [8, 16], strides = [1, 1]} : vector<8x96xf32> to vector<8x16xf32>
    %269 = vector.extract_strided_slice %247 {offsets = [0, 80], sizes = [8, 16], strides = [1, 1]} : vector<8x96xf32> to vector<8x16xf32>
    %270 = tpu.transpose %268, [1, 0] : vector<8x16xf32> -> vector<16x8xf32>
    %cst_73 = arith.constant dense<0.000000e+00> : vector<8x8xf32>
    %271 = tpu.matmul %267, %270, %cst_73 {dimension_numbers = #tpu.dot_dimension_numbers<[1], [0], [0], [1], [0, 0, 1, 1], [], []>} : vector<8x16xf32>, vector<16x8xf32>, vector<8x8xf32> -> vector<8x8xf32>
    %272 = vector.broadcast %248 : vector<1x8xf32> to vector<8x8xf32>
    %273 = arith.addf %271, %272 : vector<8x8xf32>
    %cst_74 = arith.constant dense<0xFF800000> : vector<8xf32>
    %274 = vector.multi_reduction <maximumf>, %273, %cst_74 [1] : vector<8x8xf32> to vector<8xf32>
    %275 = vector.shape_cast %274 : vector<8xf32> to vector<8x1xf32>
    %276 = vector.broadcast %275 : vector<8x1xf32> to vector<8x8xf32>
    %277 = arith.subf %273, %276 : vector<8x8xf32>
    %278 = math.exp %277 : vector<8x8xf32>
    %cst_75 = arith.constant dense<0.000000e+00> : vector<8xf32>
    %279 = vector.multi_reduction <add>, %278, %cst_75 [1] : vector<8x8xf32> to vector<8xf32>
    %280 = vector.shape_cast %279 : vector<8xf32> to vector<8x1xf32>
    %281 = tpu.reciprocal %280 {approx = true} : vector<8x1xf32> -> vector<8x1xf32>
    %282 = vector.broadcast %281 : vector<8x1xf32> to vector<8x8xf32>
    %283 = arith.mulf %278, %282 : vector<8x8xf32>
    %cst_76 = arith.constant dense<0.000000e+00> : vector<8x16xf32>
    %284 = tpu.matmul %283, %269, %cst_76 {dimension_numbers = #tpu.dot_dimension_numbers<[1], [0], [0], [1], [0, 0, 1, 1], [], []>} : vector<8x8xf32>, vector<8x16xf32>, vector<8x16xf32> -> vector<8x16xf32>
    %285 = tpu.concatenate %266, %284 in 1 : vector<8x16xf32>, vector<8x16xf32> -> vector<8x32xf32>
    %286 = tpu.concatenate %246, %285 in 0 : vector<8x32xf32>, vector<8x32xf32> -> vector<16x32xf32>
    %cst_77 = arith.constant dense<0.000000e+00> : vector<16x32xf32>
    %287 = tpu.matmul %286, %195, %cst_77 {dimension_numbers = #tpu.dot_dimension_numbers<[1], [0], [0], [1], [0, 0, 1, 1], [], []>} : vector<16x32xf32>, vector<32x32xf32>, vector<16x32xf32> -> vector<16x32xf32>
    %288 = vector.broadcast %198 : vector<1x32xf32> to vector<16x32xf32>
    %289 = arith.addf %287, %288 : vector<16x32xf32>
    %290 = arith.addf %289, %187 : vector<16x32xf32>
    %cst_78 = arith.constant dense<0.000000e+00> : vector<16xf32>
    %291 = vector.multi_reduction <add>, %290, %cst_78 [1] : vector<16x32xf32> to vector<16xf32>
    %292 = vector.shape_cast %291 : vector<16xf32> to vector<16x1xf32>
    %cst_79 = arith.constant 3.200000e+01 : f32
    %293 = vector.broadcast %cst_79 : f32 to vector<16x1xf32>
    %294 = arith.divf %292, %293 : vector<16x1xf32>
    %295 = vector.broadcast %294 : vector<16x1xf32> to vector<16x32xf32>
    %296 = arith.subf %290, %295 : vector<16x32xf32>
    %297 = arith.mulf %296, %296 : vector<16x32xf32>
    %cst_80 = arith.constant dense<0.000000e+00> : vector<16xf32>
    %298 = vector.multi_reduction <add>, %297, %cst_80 [1] : vector<16x32xf32> to vector<16xf32>
    %299 = vector.shape_cast %298 : vector<16xf32> to vector<16x1xf32>
    %cst_81 = arith.constant 3.200000e+01 : f32
    %300 = vector.broadcast %cst_81 : f32 to vector<16x1xf32>
    %301 = arith.divf %299, %300 : vector<16x1xf32>
    %cst_82 = arith.constant 9.99999996E-13 : f32
    %302 = vector.broadcast %cst_82 : f32 to vector<16x1xf32>
    %303 = arith.addf %301, %302 : vector<16x1xf32>
    %304 = math.rsqrt %303 : vector<16x1xf32>
    %305 = vector.broadcast %304 : vector<16x1xf32> to vector<16x32xf32>
    %306 = arith.mulf %296, %305 : vector<16x32xf32>
    %307 = vector.broadcast %199 : vector<1x32xf32> to vector<16x32xf32>
    %308 = arith.mulf %306, %307 : vector<16x32xf32>
    %309 = vector.broadcast %200 : vector<1x32xf32> to vector<16x32xf32>
    %310 = arith.addf %308, %309 : vector<16x32xf32>
    %cst_83 = arith.constant dense<0.000000e+00> : vector<16x64xf32>
    %311 = tpu.matmul %310, %196, %cst_83 {dimension_numbers = #tpu.dot_dimension_numbers<[1], [0], [0], [1], [0, 0, 1, 1], [], []>} : vector<16x32xf32>, vector<32x64xf32>, vector<16x64xf32> -> vector<16x64xf32>
    %312 = vector.broadcast %201 : vector<1x64xf32> to vector<16x64xf32>
    %313 = arith.addf %311, %312 : vector<16x64xf32>
    %cst_84 = arith.constant 5.000000e-01 : f32
    %314 = vector.broadcast %cst_84 : f32 to vector<16x64xf32>
    %315 = arith.mulf %314, %313 : vector<16x64xf32>
    %cst_85 = arith.constant 4.471500e-02 : f32
    %316 = vector.broadcast %cst_85 : f32 to vector<16x64xf32>
    %317 = arith.mulf %316, %313 : vector<16x64xf32>
    %318 = arith.mulf %317, %313 : vector<16x64xf32>
    %319 = arith.mulf %318, %313 : vector<16x64xf32>
    %320 = arith.addf %313, %319 : vector<16x64xf32>
    %cst_86 = arith.constant 0.797884583 : f32
    %321 = vector.broadcast %cst_86 : f32 to vector<16x64xf32>
    %322 = arith.mulf %321, %320 : vector<16x64xf32>
    %323 = math.tanh %322 : vector<16x64xf32>
    %cst_87 = arith.constant 1.000000e+00 : f32
    %324 = vector.broadcast %cst_87 : f32 to vector<16x64xf32>
    %325 = arith.addf %324, %323 : vector<16x64xf32>
    %326 = arith.mulf %315, %325 : vector<16x64xf32>
    %cst_88 = arith.constant dense<0.000000e+00> : vector<16x32xf32>
    %327 = tpu.matmul %326, %191, %cst_88 {dimension_numbers = #tpu.dot_dimension_numbers<[1], [0], [0], [1], [0, 0, 1, 1], [], []>} : vector<16x64xf32>, vector<64x32xf32>, vector<16x32xf32> -> vector<16x32xf32>
    %328 = vector.broadcast %202 : vector<1x32xf32> to vector<16x32xf32>
    %329 = arith.addf %327, %328 : vector<16x32xf32>
    %330 = arith.addf %329, %310 : vector<16x32xf32>
    %cst_89 = arith.constant dense<0.000000e+00> : vector<16xf32>
    %331 = vector.multi_reduction <add>, %330, %cst_89 [1] : vector<16x32xf32> to vector<16xf32>
    %332 = vector.shape_cast %331 : vector<16xf32> to vector<16x1xf32>
    %cst_90 = arith.constant 3.200000e+01 : f32
    %333 = vector.broadcast %cst_90 : f32 to vector<16x1xf32>
    %334 = arith.divf %332, %333 : vector<16x1xf32>
    %335 = vector.broadcast %334 : vector<16x1xf32> to vector<16x32xf32>
    %336 = arith.subf %330, %335 : vector<16x32xf32>
    %337 = arith.mulf %336, %336 : vector<16x32xf32>
    %cst_91 = arith.constant dense<0.000000e+00> : vector<16xf32>
    %338 = vector.multi_reduction <add>, %337, %cst_91 [1] : vector<16x32xf32> to vector<16xf32>
    %339 = vector.shape_cast %338 : vector<16xf32> to vector<16x1xf32>
    %cst_92 = arith.constant 3.200000e+01 : f32
    %340 = vector.broadcast %cst_92 : f32 to vector<16x1xf32>
    %341 = arith.divf %339, %340 : vector<16x1xf32>
    %cst_93 = arith.constant 9.99999996E-13 : f32
    %342 = vector.broadcast %cst_93 : f32 to vector<16x1xf32>
    %343 = arith.addf %341, %342 : vector<16x1xf32>
    %344 = math.rsqrt %343 : vector<16x1xf32>
    %345 = vector.broadcast %344 : vector<16x1xf32> to vector<16x32xf32>
    %346 = arith.mulf %336, %345 : vector<16x32xf32>
    %347 = vector.broadcast %203 : vector<1x32xf32> to vector<16x32xf32>
    %348 = arith.mulf %346, %347 : vector<16x32xf32>
    %349 = vector.broadcast %204 : vector<1x32xf32> to vector<16x32xf32>
    %350 = arith.addf %348, %349 : vector<16x32xf32>
    %c0_94 = arith.constant 0 : index
    %c0_95 = arith.constant 0 : index
    %351 = vector.load %arg6[%c0_94, %c0_95] : memref<32x160xf32, #tpu.memory_space<vmem>>, vector<32x160xf32>
    %352 = vector.extract_strided_slice %350 {offsets = [0, 0], sizes = [1, 32], strides = [1, 1]} : vector<16x32xf32> to vector<1x32xf32>
    %353 = vector.extract_strided_slice %350 {offsets = [8, 0], sizes = [1, 32], strides = [1, 1]} : vector<16x32xf32> to vector<1x32xf32>
    %354 = tpu.concatenate %352, %353 in 0 : vector<1x32xf32>, vector<1x32xf32> -> vector<2x32xf32>
    %355 = vector.extract_strided_slice %351 {offsets = [0, 0], sizes = [32, 32], strides = [1, 1]} : vector<32x160xf32> to vector<32x32xf32>
    %cst_96 = arith.constant dense<0.000000e+00> : vector<2x32xf32>
    %356 = tpu.matmul %354, %355, %cst_96 {dimension_numbers = #tpu.dot_dimension_numbers<[1], [0], [0], [1], [0, 0, 1, 1], [], []>} : vector<2x32xf32>, vector<32x32xf32>, vector<2x32xf32> -> vector<2x32xf32>
    %357 = vector.extract_strided_slice %0 {offsets = [0, 0], sizes = [1, 32], strides = [1, 1]} : vector<4x128xf32> to vector<1x32xf32>
    %358 = vector.broadcast %357 : vector<1x32xf32> to vector<2x32xf32>
    %359 = arith.addf %356, %358 : vector<2x32xf32>
    %360 = math.tanh %359 : vector<2x32xf32>
    %361 = vector.extract_strided_slice %351 {offsets = [0, 32], sizes = [32, 128], strides = [1, 1]} : vector<32x160xf32> to vector<32x128xf32>
    %cst_97 = arith.constant dense<0.000000e+00> : vector<2x128xf32>
    %362 = tpu.matmul %360, %361, %cst_97 {dimension_numbers = #tpu.dot_dimension_numbers<[1], [0], [0], [1], [0, 0, 1, 1], [], []>} : vector<2x32xf32>, vector<32x128xf32>, vector<2x128xf32> -> vector<2x128xf32>
    %363 = vector.extract_strided_slice %0 {offsets = [1, 0], sizes = [1, 128], strides = [1, 1]} : vector<4x128xf32> to vector<1x128xf32>
    %364 = vector.broadcast %363 : vector<1x128xf32> to vector<2x128xf32>
    %365 = arith.addf %362, %364 : vector<2x128xf32>
    %c0_98 = arith.constant 0 : index
    %c0_99 = arith.constant 0 : index
    %366 = vector.load %arg8[%c0_98, %c0_99] : memref<2x128xf32, #tpu.memory_space<vmem>>, vector<2x128xf32>
    tpu.vector_store %arg8[%c0_98, %c0_99], %365 {strides = array<i32>} : memref<2x128xf32, #tpu.memory_space<vmem>>, vector<2x128xf32>,
    return
  }
  func.func @transform_0(%arg0: i32) -> (i32, i32) {
    %c0_i32 = arith.constant 0 : i32
    %c0_i32_0 = arith.constant 0 : i32
    %c0_i32_1 = arith.constant 0 : i32
    return %c0_i32, %c0_i32_0 : i32, i32
  }
  func.func @transform_1(%arg0: i32) -> (i32, i32) {
    %c0_i32 = arith.constant 0 : i32
    %c0_i32_0 = arith.constant 0 : i32
    %c0_i32_1 = arith.constant 0 : i32
    return %c0_i32, %c0_i32_0 : i32, i32
  }
  func.func @transform_2(%arg0: i32) -> (i32, i32, i32) {
    %c0_i32 = arith.constant 0 : i32
    %c0_i32_0 = arith.constant 0 : i32
    %c0_i32_1 = arith.constant 0 : i32
    %c0_i32_2 = arith.constant 0 : i32
    return %c0_i32, %c0_i32_0, %c0_i32_1 : i32, i32, i32
  }
  func.func @transform_3(%arg0: i32) -> (i32, i32, i32) {
    %c0_i32 = arith.constant 0 : i32
    %c0_i32_0 = arith.constant 0 : i32
    %c0_i32_1 = arith.constant 0 : i32
    %c0_i32_2 = arith.constant 0 : i32
    return %c0_i32, %c0_i32_0, %c0_i32_1 : i32, i32, i32
  }
  func.func @transform_4(%arg0: i32) -> (i32, i32, i32) {
    %c0_i32 = arith.constant 0 : i32
    %c0_i32_0 = arith.constant 0 : i32
    %c0_i32_1 = arith.constant 0 : i32
    %c0_i32_2 = arith.constant 0 : i32
    return %c0_i32, %c0_i32_0, %c0_i32_1 : i32, i32, i32
  }
  func.func @transform_5(%arg0: i32) -> (i32, i32) {
    %c0_i32 = arith.constant 0 : i32
    %c0_i32_0 = arith.constant 0 : i32
    %c0_i32_1 = arith.constant 0 : i32
    return %c0_i32, %c0_i32_0 : i32, i32
  }
  func.func @transform_6(%arg0: i32) -> (i32, i32) {
    %c0_i32 = arith.constant 0 : i32
    %c0_i32_0 = arith.constant 0 : i32
    %c0_i32_1 = arith.constant 0 : i32
    return %c0_i32, %c0_i32_0 : i32, i32
  }
  func.func @transform_7(%arg0: i32) -> (i32, i32) {
    %c0_i32 = arith.constant 0 : i32
    %c0_i32_0 = arith.constant 0 : i32
    %c0_i32_1 = arith.constant 0 : i32
    return %c0_i32, %c0_i32_0 : i32, i32
  }
}

</mosaic_0001>

<bundles_post_ra>
// kernel: naver_model_forward.1
= control target key start
LH: loop header
LB: loop body
LE: loop exit
PB: predicated region body
PF: predicated region fallthrough
CT: control target
= control target key end

     0   :  { %vm30_vm0 = vcmask 261120   ;;  %s3713_s0 = inlined_call_operand.vmem [shape: f32[16,32], index: 0, kind: input, shape index: {}]   ;;  %s3714_s1 = inlined_call_operand.vmem [shape: f32[2,8], index: 1, kind: input, shape index: {}]   ;;  %s3715_s2 = inlined_call_operand.vmem [shape: f32[2,32,192], index: 2, kind: input, shape index: {}]   ;;  %s3716_s3 = inlined_call_operand.vmem [shape: f32[2,64,32], index: 3, kind: input, shape index: {}]   ;;  %s3717_s4 = inlined_call_operand.vmem [shape: f32[2,8,96], index: 4, kind: input, shape index: {}]   ;;  %s3718_s5 = inlined_call_operand.vmem [shape: f32[32,160], index: 5, kind: input, shape index: {}]   ;;  %s3719_s6 = inlined_call_operand.vmem [shape: f32[4,128], index: 6, kind: input, shape index: {}]   ;;  %s3720_s7 = inlined_call_operand.hbm [shape: f32[2,128], index: 7, kind: output, shape index: {}]  }
   0x1   :  { %v28_v0 = vld [vmem:[%s3713_s0] sm:$0xff]  ;;  %v29_v1 = vld [vmem:[%s3713_s0 + $0x8] sm:$0xff] }
   0x2   :  { %12 = vsyncpa [#allocation3], 0  ;;  %v31_v2 = vsel %vm30_vm0, %v28_v0, 0.0  ;;  %v34_v3 = vsel %vm30_vm0, %v29_v1, 0.0  ;;  %v3236_v14 = vld [vmem:[%s3715_s2] sm:$0xff]  ;;  %v3241_v15 = vld [vmem:[%s3715_s2 + $0x10] sm:$0xff]  ;;  %v58_v23 = vlaneseq }
   0x3   :  { %32 = vadd.xlane.f32.xlu0 %v31_v2  ;;  %v3246_v16 = vld [vmem:[%s3715_s2 + $0x20] sm:$0xff]  ;;  %v3045_v17 = vpack.i.bf16 %v3241_v15, %v3236_v14  ;;  %v2942_v18 = vpack.c.bf16 %v3241_v15, %v3236_v14  ;;  %v3255_v19 = vld [vmem:[%s3715_s2 + $0x30] sm:$0xff]  ;;  %v3172_v42 = vmov 0.0   ;;  %vm3173_vm1 = vmmov 0   ;;  %s3174_s16 = smov 80   ;;  %s3175_s17 = smov 96  }
   0x4   :  { %v2946_v20 = vpack.c.bf16 %v3255_v19, %v3246_v16  ;;  %v3259_v27 = vshrl.u32 %v58_v23, 7  ;;  %v27_v30 = vld [vmem:[%s3719_s6] sm:$0xf]  ;;  %2747 = vmatprep.subr.mxu1 %v3172_v42  ;;  %2749 = vmatprep.mubr.msk.f32.mxu1 %vm3173_vm1, %v3172_v42  ;;  %s3176_s18 = smov 112   ;;  %vm180_vm2 = vcmask 130048   ;;  %vm255_vm3 = vcmask 64512  }
   0x5   :  { %2943 = vmatprep.subr.bf16.mxu0 %v2942_v18  ;;  %v3292_v44 = vld [vmem:[%s3717_s4] sm:$0xff]  ;;  %s3178_s21 = smov 64   ;;  %s3179_s22 = smov 32   ;;  %vm1099_vm4 = vcmask 523264   ;;  %vm2482_vm5 = vcmask 785408   ;;  %vm2374_vm6 = vcmask 1040384  }
   0x6   :  { %2945 = vmatpush3.bf16.msra.mxu0 %v2942_v18  ;;  %v3262_v29 = vsub.s32 2, %v3259_v27  ;;  %v3268_v31 = vsub.s32 3, %v3259_v27  ;;  %v3287_v43 = vsub.s32 0, %v3259_v27  ;;  %v70_v56 = vld [vmem:[%s3714_s1] sm:$0x3]  ;;  %v3339_v62 = vsub.s32 1, %v3259_v27 }
   0x7   :  { %35 = vadd.xlane.f32.xlu0 %v34_v3  ;;  %2947 = vmatprep.subr.bf16.mxu0 %v2946_v20  ;;  %s3177_s1 = smov 48   ;;  %s3180_s23 = smov 16  }
   0x8   :  { %v61_v32 = vrot.slane %v27_v30, %v3262_v29  ;;  %v67_v35 = vrot.slane %v27_v30, %v3268_v31  ;;  %v91_v45 = vrot.slane %v3292_v44, %v3287_v43  ;;  %v3335_v57 = vrot.slane %v70_v56, %v3287_v43  ;;  %s3182_s27 = smov [#allocation2]  }
   0x9   :  { %v3345_v3 = vrot.slane %v70_v56, %v3339_v62  ;;  %s2571_s0 = sshll.u32 %s3182_s27, 4  ;;  %s2572_s0 = int_to_ptr.vmem [resolvable:$true] %s2571_s0 }
   0xa   :  { %2949 = vmatpush3.bf16.msra.mxu0 %v2946_v20  ;;  %s3148_s28 = scalar_lea.vmem %s2572_s0, 32  ;;  %p3153_p1 = scmp.lt.s32.totalorder %s2572_s0, %s2572_s0 }
   0xb   :  { %2757 = vmatprep.subr.mxu0 %v3172_v42  ;;  %p3149_p0 = scmp.ne.s32.totalorder %s2572_s0, %s3148_s28  ;;  %p3154_p2 = scmp.lt.s32.totalorder %s3148_s28, %s3148_s28 }
   0xd   :  { %p3155_p3 = por %p3154_p2, %p3153_p1 }
   0xf   :  { %p3156_p4 = pnand %p3155_p3, %p3149_p0 }
  0x90   :  { %v33_v4 = vpop.xlane.xlu0 %32 }
  0x91   :  { %v38_v5 = vmul.f32 0.03125, %v33_v4 }
  0x93   :  { %v40_v6 = vsub.f32 %v28_v0, %v38_v5 }
  0x94   :  { %v36_v7 = vpop.xlane.xlu0 %35 }
  0x95   :  { %v39_v8 = vmul.f32 0.03125, %v36_v7  ;;  %v42_v9 = vmul.f32 %v40_v6, %v40_v6 }
  0x97   :  { %v41_v10 = vsub.f32 %v29_v1, %v39_v8  ;;  %v44_v11 = vsel %vm30_vm0, %v42_v9, 0.0 }
  0x98   :  { %45 = vadd.xlane.f32.xlu1 %v44_v11 }
  0x99   :  { %v43_v12 = vmul.f32 %v41_v10, %v41_v10 }
  0x9b   :  { %v47_v13 = vsel %vm30_vm0, %v43_v12, 0.0 }
  0x9c   :  { %48 = vadd.xlane.f32.xlu1 %v47_v13 }
 0x125   :  { %v46_v21 = vpop.xlane.xlu1 %45 }
 0x126   :  { %v50_v22 = vmul.f32 0.03125, %v46_v21 }
 0x128   :  { %v52_v24 = vadd.f32 1e-12, %v50_v22 }
 0x129   :  { %v49_v25 = vpop.xlane.xlu1 %48 }
 0x12a   :  { %3085 = vrsqrt.f32 %v52_v24  ;;  %v51_v26 = vmul.f32 0.03125, %v49_v25 }
 0x12c   :  { %v53_v28 = vadd.f32 1e-12, %v51_v26 }
 0x12e   :  { %3087 = vrsqrt.f32 %v53_v28 }
 0x134   :  { %v3086_v33 = vpop.eup %3085 }
 0x135   :  { %v56_v34 = vmul.f32 %v3086_v33, %v40_v6 }
 0x137   :  { %v62_v36 = vmul.f32 %v61_v32, %v56_v34 }
 0x138   :  { %v3088_v37 = vpop.eup %3087 }
 0x139   :  { %v57_v38 = vmul.f32 %v3088_v37, %v41_v10  ;;  %v3272_v39 = vadd.f32 %v67_v35, %v62_v36 }
 0x13b   :  { %v63_v40 = vmul.f32 %v61_v32, %v57_v38  ;;  %2744 = vmatprep.mubr.msk.f32.mxu0 %vm30_vm0, %v3272_v39 }
 0x13d   :  { %v3276_v41 = vadd.f32 %v67_v35, %v63_v40 }
 0x13f   :  { %2745 = vmatmul.mubr.msk.f32.vlgmr.msra.gmra.mrb[0].mxu0 %vm30_vm0, %v3276_v41 }
 0x140   :  { %2759 = vmatprep.mubr.msk.f32.mxu0 %vm3173_vm1, %v3172_v42 }
 0x212   :  { %v2746_v46 = vpop.f32.mrb[0].mxu0 }
 0x213   :  { %v164_v47 = vpop.f32.mrb[1].mxu0  ;;  %v3302_v49 = vadd.f32 %v2746_v46, %v91_v45 }
 0x214   :  { %v3296_v48 = vadd.f32 %v164_v47, %v91_v45 }
 0x216   :  { %345 = vrot.lane.b32.xlu1 %v3296_v48, %s3174_s16  ;;  %178 = vrot.lane.b32.xlu0 %v3296_v48, %s3175_s17 }
 0x21a   :  { %343 = vrot.lane.b32.xlu1 %v3296_v48, %s3176_s18  ;;  %683 = vrot.lane.b32.xlu0 %v3302_v49, %s3174_s16 }
 0x21e   :  { %518 = vrot.lane.b32.xlu1 %v3302_v49, %s3175_s17 }
 0x222   :  { %681 = vrot.lane.b32.xlu1 %v3302_v49, %s3176_s18 }
 0x288   :  { %v346_v50 = vpop.permute.xlu1 %345  ;;  %v179_v51 = vpop.permute.xlu0 %178 }
 0x289   :  { %2748 = vmatpush3.xpose.msk.msra.mxu1 %vm180_vm2, %v179_v51  ;;  %2758 = vmatpush3.xpose.msk.msra.mxu0 %vm180_vm2, %v346_v50 }
 0x28a   :  { %2767 = vmatprep.subr.mxu0 %v3172_v42  ;;  %2752 = vmatprep.subr.mxu1 %v3172_v42 }
 0x28c   :  { %v344_v52 = vpop.permute.xlu1 %343  ;;  %2750 = vmatmul.mubr.msk.f32.vlgmr.msra.gmra.mrb[0].mxu1 %vm180_vm2, %v3296_v48  ;;  %v684_v54 = vpop.permute.xlu0 %683 }
 0x28d   :  { %2760 = vmatmul.mubr.msk.f32.vlgmr.msra.gmra.mrb[2].mxu0 %vm180_vm2, %v344_v52  ;;  %2754 = vmatprep.mubr.msk.f32.mxu1 %vm3173_vm1, %v3172_v42 }
 0x28e   :  { %2769 = vmatprep.mubr.msk.f32.mxu0 %vm3173_vm1, %v3172_v42 }
 0x290   :  { %v519_v53 = vpop.permute.xlu1 %518 }
 0x291   :  { %2768 = vmatpush3.xpose.msk.msra.mxu0 %vm180_vm2, %v519_v53 }
 0x292   :  { %2777 = vmatprep.subr.mxu0 %v3172_v42 }
 0x294   :  { %2770 = vmatmul.mubr.msk.f32.vlgmr.msra.gmra.mrb[4].mxu0 %vm180_vm2, %v3302_v49  ;;  %v682_v55 = vpop.permute.xlu1 %681 }
 0x295   :  { %2778 = vmatpush3.xpose.msk.msra.mxu0 %vm180_vm2, %v684_v54  ;;  %2779 = vmatprep.mubr.msk.f32.mxu0 %vm3173_vm1, %v3172_v42 }
 0x298   :  { %2780 = vmatmul.mubr.msk.f32.vlgmr.msra.gmra.mrb[6].mxu0 %vm180_vm2, %v682_v55 }
 0x35f   :  { %v251_v58 = vpop.f32.mrb[0].mxu1 }
 0x360   :  { %v252_v59 = vadd.f32 %v251_v58, %v3335_v57  ;;  %v2751_v60 = vpop.f32.mrb[1].mxu1  ;;  %v417_v61 = vpop.f32.mrb[2].mxu0 }
 0x361   :  { %v418_v63 = vadd.f32 %v417_v61, %v3335_v57  ;;  %v2761_v0 = vpop.f32.mrb[3].mxu0 }
 0x362   :  { %v256_v1 = vsel %vm255_vm3, %v252_v59, -inf }
 0x363   :  { %257 = vmax.xlane.f32.xlu0 %v256_v1  ;;  %v421_v2 = vsel %vm255_vm3, %v418_v63, -inf }
 0x364   :  { %422 = vmax.xlane.f32.xlu1 %v421_v2 }
 0x367   :  { %v590_v4 = vpop.f32.mrb[4].mxu0 }
 0x368   :  { %v591_v5 = vadd.f32 %v590_v4, %v3345_v3  ;;  %v2771_v6 = vpop.f32.mrb[5].mxu0 }
 0x36a   :  { %v594_v7 = vsel %vm255_vm3, %v591_v5, -inf }
 0x36b   :  { %595 = vmax.xlane.f32.xlu0 %v594_v7  ;;  %v755_v8 = vpop.f32.mrb[6].mxu0 }
 0x36c   :  { %v756_v9 = vadd.f32 %v755_v8, %v3345_v3  ;;  %v2781_v10 = vpop.f32.mrb[7].mxu0 }
 0x36e   :  { %v759_v11 = vsel %vm255_vm3, %v756_v9, -inf }
 0x36f   :  { %760 = vmax.xlane.f32.xlu0 %v759_v11 }
 0x3f0   :  { %v258_v12 = vpop.xlane.xlu0 %257 }
 0x3f1   :  { %v259_v13 = vsub.f32 %v252_v59, %v258_v12  ;;  %v423_v18 = vpop.xlane.xlu1 %422 }
 0x3f2   :  { %v424_v20 = vsub.f32 %v418_v63, %v423_v18  ;;  %v3050_v63 = vpack.i.bf16 %v3255_v19, %v3246_v16 }
 0x3f3   :  { %v260_v21 = vmul.f32 1.442695, %v259_v13 }
 0x3f4   :  { %v425_v22 = vmul.f32 1.442695, %v424_v20 }
 0x3f5   :  { %3089 = vpow2.f32 %v260_v21  ;;  %v854_v21 = vrot.slane %v3292_v44, %v3339_v62 }
 0x3f6   :  { %3091 = vpow2.f32 %v425_v22 }
 0x3f8   :  { %v596_v23 = vpop.xlane.xlu0 %595 }
 0x3f9   :  { %v597_v24 = vsub.f32 %v591_v5, %v596_v23 }
 0x3fb   :  { %v598_v25 = vmul.f32 1.442695, %v597_v24 }
 0x3fc   :  { %v761_v35 = vpop.xlane.xlu0 %760 }
 0x3fd   :  { %3093 = vpow2.f32 %v598_v25  ;;  %v762_v36 = vsub.f32 %v756_v9, %v761_v35 }
 0x3ff   :  { %v3090_v26 = vpop.eup %3089  ;;  %v763_v37 = vmul.f32 1.442695, %v762_v36 }
 0x400   :  { %v3092_v28 = vpop.eup %3091  ;;  %v262_v30 = vsel %vm255_vm3, %v3090_v26, 0.0 }
 0x401   :  { %263 = vadd.xlane.f32.xlu0 %v262_v30  ;;  %v427_v32 = vsel %vm255_vm3, %v3092_v28, 0.0  ;;  %3095 = vpow2.f32 %v763_v37 }
 0x402   :  { %428 = vadd.xlane.f32.xlu1 %v427_v32 }
 0x407   :  { %v3094_v33 = vpop.eup %3093 }
 0x408   :  { %v600_v34 = vsel %vm255_vm3, %v3094_v33, 0.0 }
 0x409   :  { %601 = vadd.xlane.f32.xlu0 %v600_v34 }
 0x40b   :  { %v3096_v38 = vpop.eup %3095 }
 0x40c   :  { %v765_v40 = vsel %vm255_vm3, %v3096_v38, 0.0 }
 0x413   :  { %432 = vrot.lane.b32.xlu1 %v3296_v48, %s3177_s1 }
 0x417   :  { %605 = vrot.lane.b32.xlu1 %v3302_v49, %s3178_s21 }
 0x41f   :  { %267 = vrot.lane.b32.xlu0 %v3296_v48, %s3178_s21 }
 0x423   :  { %3046 = vrot.lane.b32.xlu0 %v3045_v17, %s3179_s22 }
 0x43b   :  { %766 = vadd.xlane.f32.xlu1 %v765_v40 }
 0x44c   :  { %770 = vrot.lane.b32.xlu1 %v3302_v49, %s3177_s1 }
 0x450   :  { %3051 = vrot.lane.b32.xlu1 %v3050_v63, %s3179_s22  ;;  %v989_v63 = vrot.slane %v3292_v44, %v3268_v31 }
 0x48e   :  { %v264_v45 = vpop.xlane.xlu0 %263 }
 0x48f   :  { %3097 = vrcp.f32 %v264_v45  ;;  %v429_v46 = vpop.xlane.xlu1 %428 }
 0x490   :  { %3099 = vrcp.f32 %v429_v46 }
 0x493   :  { %v433_v48 = vpop.permute.xlu1 %432 }
 0x496   :  { %v602_v47 = vpop.xlane.xlu0 %601 }
 0x497   :  { %3101 = vrcp.f32 %v602_v47  ;;  %v606_v54 = vpop.permute.xlu1 %605  ;;  %v74_v47 = vld [vmem:[%s3715_s2 + $0x18] sm:$0xff] }
 0x499   :  { %v3098_v50 = vpop.eup %3097 }
 0x49a   :  { %v266_v51 = vmul.f32 %v3098_v50, %v3090_v26  ;;  %v268_v52 = vpop.permute.xlu0 %267  ;;  %v3100_v53 = vpop.eup %3099 }
 0x49b   :  { %2753 = vmatpush3.msra.mxu1 %v268_v52  ;;  %v431_v49 = vmul.f32 %v3100_v53, %v3092_v28 }
 0x49c   :  { %2755 = vmatmul.mubr.msk.f32.vlgmr.msra.gmra.mrb[2].mxu1 %vm255_vm3, %v266_v51  ;;  %2762 = vmatprep.subr.mxu1 %v3172_v42  ;;  %v76_v51 = vld [vmem:[%s3715_s2 + $0x28] sm:$0xff] }
 0x49d   :  { %2763 = vmatpush3.msra.mxu1 %v433_v48  ;;  %2764 = vmatprep.mubr.msk.f32.mxu1 %vm3173_vm1, %v3172_v42  ;;  %v78_v48 = vld [vmem:[%s3715_s2 + $0x38] sm:$0xff] }
 0x49e   :  { %2772 = vmatprep.subr.mxu1 %v3172_v42  ;;  %v3047_v0 = vpop.permute.xlu0 %3046  ;;  %v2962_v52 = vpack.c.bf16 %v78_v48, %v76_v51  ;;  %v1097_v51 = vsub.s32 5, %v3259_v27 }
 0x49f   :  { %v3049_v1 = vunpack.i.h.bf16 %v3047_v0  ;;  %v3048_v2 = vunpack.i.l.bf16 %v3047_v0 }
 0x4a0   :  { %2765 = vmatmul.mubr.msk.f32.vlgmr.msra.gmra.mrb[4].mxu1 %vm255_vm3, %v431_v49  ;;  %v1098_v48 = vrot.slane %v3292_v44, %v1097_v51 }
 0x4a1   :  { %v3102_v55 = vpop.eup %3101  ;;  %2773 = vmatpush3.msra.mxu1 %v606_v54  ;;  %2774 = vmatprep.mubr.msk.f32.mxu1 %vm3173_vm1, %v3172_v42  ;;  %v2950_v4 = vpack.c.bf16 %v3049_v1, %v3048_v2 }
 0x4a2   :  { %v604_v56 = vmul.f32 %v3102_v55, %v3094_v33  ;;  %2782 = vmatprep.subr.mxu1 %v3172_v42 }
 0x4a3   :  { %2951 = vmatprep.subr.bf16.mxu0 %v2950_v4 }
 0x4a4   :  { %2775 = vmatmul.mubr.msk.f32.vlgmr.msra.gmra.mrb[6].mxu1 %vm255_vm3, %v604_v56  ;;  %2953 = vmatpush3.bf16.msra.mxu0 %v2950_v4 }
 0x4a5   :  { %2784 = vmatprep.mubr.msk.f32.mxu1 %vm3173_vm1, %v3172_v42 }
 0x4c8   :  { %v767_v58 = vpop.xlane.xlu1 %766 }
 0x4c9   :  { %3103 = vrcp.f32 %v767_v58 }
 0x4cc   :  { %v771_v59 = vpop.permute.xlu1 %770 }
 0x4cd   :  { %2783 = vmatpush3.msra.mxu1 %v771_v59  ;;  %v983_v59 = vrot.slane %v3292_v44, %v3262_v29 }
 0x4d0   :  { %v3052_v5 = vpop.permute.xlu1 %3051 }
 0x4d1   :  { %v3054_v6 = vunpack.i.h.bf16 %v3052_v5  ;;  %v3053_v7 = vunpack.i.l.bf16 %v3052_v5 }
 0x4d3   :  { %v3104_v60 = vpop.eup %3103  ;;  %v2954_v9 = vpack.c.bf16 %v3054_v6, %v3053_v7  ;;  %v79_v7 = vld [vmem:[%s3716_s3] sm:$0xff] }
 0x4d4   :  { %v769_v61 = vmul.f32 %v3104_v60, %v3096_v38 }
 0x4d5   :  { %2955 = vmatprep.subr.bf16.mxu0 %v2954_v9 }
 0x4d6   :  { %2785 = vmatmul.mubr.msk.f32.vlgmr.msra.gmra.mrb[8].mxu1 %vm255_vm3, %v769_v61  ;;  %2957 = vmatpush3.bf16.msra.mxu0 %v2954_v9 }
 0x56f   :  { %v339_v8 = vpop.f32.mrb[2].mxu1 }
 0x570   :  { %v2756_v10 = vpop.f32.mrb[3].mxu1 }
 0x571   :  { %v81_v10 = vld [vmem:[%s3716_s3 + $0x10] sm:$0xff] }
 0x573   :  { %v504_v14 = vpop.f32.mrb[4].mxu1 }
 0x574   :  { %509 = vrot.lane.b32.xlu0 %v504_v14, %s3180_s23  ;;  %v2766_v15 = vpop.f32.mrb[5].mxu1  ;;  %v82_v14 = vld [vmem:[%s3716_s3 + $0x18] sm:$0xff] }
 0x575   :  { %v2970_v15 = vpack.c.bf16 %v82_v14, %v81_v10  ;;  %v3475_v14 = vld [vmem:[%s3715_s2 + $0x60] sm:$0xff] }
 0x577   :  { %v677_v16 = vpop.f32.mrb[6].mxu1 }
 0x578   :  { %v2776_v17 = vpop.f32.mrb[7].mxu1 }
 0x579   :  { %v84_v17 = vld [vmem:[%s3716_s3 + $0x28] sm:$0xff] }
 0x5a9   :  { %v842_v19 = vpop.f32.mrb[8].mxu1 }
 0x5aa   :  { %847 = vrot.lane.b32.xlu1 %v842_v19, %s3180_s23  ;;  %v2786_v11 = vpop.f32.mrb[9].mxu1 }
 0x5ab   :  { %v85_v11 = vld [vmem:[%s3716_s3 + $0x30] sm:$0xff] }
 0x5e6   :  { %v510_v12 = vpop.permute.xlu0 %509 }
 0x5e7   :  { %v512_v13 = vsel %vm180_vm2, %v339_v8, %v510_v12  ;;  %v80_v8 = vld [vmem:[%s3716_s3 + $0x8] sm:$0xff]  ;;  %v86_v12 = vld [vmem:[%s3716_s3 + $0x38] sm:$0xff] }
 0x5e8   :  { %2795 = vmatprep.mubr.msk.f32.mxu0 %vm30_vm0, %v512_v13  ;;  %v2966_v9 = vpack.c.bf16 %v80_v8, %v79_v7  ;;  %v2978_v13 = vpack.c.bf16 %v86_v12, %v85_v11 }
 0x5ea   :  { %2967 = vmatprep.subr.bf16.mxu0 %v2966_v9 }
 0x61c   :  { %v848_v18 = vpop.permute.xlu1 %847 }
 0x61d   :  { %v850_v20 = vsel %vm180_vm2, %v677_v16, %v848_v18  ;;  %v83_v16 = vld [vmem:[%s3716_s3 + $0x20] sm:$0xff]  ;;  %v994_v18 = vsub.s32 4, %v3259_v27 }
 0x61e   :  { %2796 = vmatmul.mubr.msk.f32.vlgmr.msra.gmra.mrb[8].mxu0 %vm30_vm0, %v850_v20  ;;  %v2974_v19 = vpack.c.bf16 %v84_v17, %v83_v16 }
 0x61f   :  { %2969 = vmatpush3.bf16.msra.mxu0 %v2966_v9  ;;  %v995_v20 = vrot.slane %v3292_v44, %v994_v18  ;;  %v3468_v9 = vld [vmem:[%s3715_s2 + $0x50] sm:$0xff] }
 0x620   :  { %2971 = vmatprep.subr.bf16.mxu0 %v2970_v15 }
 0x623   :  { %2973 = vmatpush3.bf16.msra.mxu0 %v2970_v15  ;;  %v3480_v15 = vld [vmem:[%s3715_s2 + $0x70] sm:$0xff] }
 0x624   :  { %2975 = vmatprep.subr.bf16.mxu0 %v2974_v19  ;;  %v2986_v16 = vpack.c.bf16 %v3480_v15, %v3475_v14 }
 0x627   :  { %2977 = vmatpush3.bf16.msra.mxu0 %v2974_v19 }
 0x628   :  { %2979 = vmatprep.subr.bf16.mxu0 %v2978_v13 }
 0x62b   :  { %2981 = vmatpush3.bf16.msra.mxu0 %v2978_v13 }
 0x62c   :  { %2849 = vmatprep.subr.mxu0 %v3172_v42 }
 0x6f1   :  { %v2797_v22 = vpop.f32.mrb[8].mxu0 }
 0x6f2   :  { %v949_v23 = vadd.f32 %v2797_v22, %v854_v21  ;;  %v943_v24 = vpop.f32.mrb[9].mxu0 }
 0x6f3   :  { %v944_v25 = vadd.f32 %v943_v24, %v854_v21 }
 0x6f4   :  { %v953_v26 = vadd.f32 %v949_v23, %v3276_v41 }
 0x6f5   :  { %v952_v28 = vadd.f32 %v944_v25, %v3272_v39  ;;  %v72_v39 = vld [vmem:[%s3715_s2 + $0x8] sm:$0xff] }
 0x6f6   :  { %v957_v30 = vsel %vm30_vm0, %v953_v26, 0.0  ;;  %v2958_v50 = vpack.c.bf16 %v74_v47, %v72_v39 }
 0x6f7   :  { %958 = vadd.xlane.f32.xlu1 %v957_v30  ;;  %v954_v32 = vsel %vm30_vm0, %v952_v28, 0.0 }
 0x6f8   :  { %955 = vadd.xlane.f32.xlu0 %v954_v32  ;;  %2959 = vmatprep.subr.bf16.mxu1 %v2958_v50 }
 0x6f9   :  { %2961 = vmatpush3.bf16.msra.mxu1 %v2958_v50 }
 0x6fa   :  { %2963 = vmatprep.subr.bf16.mxu1 %v2962_v52 }
 0x6fd   :  { %2965 = vmatpush3.bf16.msra.mxu1 %v2962_v52 }
 0x784   :  { %v959_v33 = vpop.xlane.xlu1 %958 }
 0x785   :  { %v961_v34 = vmul.f32 0.03125, %v959_v33  ;;  %v956_v35 = vpop.xlane.xlu0 %955 }
 0x786   :  { %v960_v36 = vmul.f32 0.03125, %v956_v35 }
 0x787   :  { %v963_v37 = vsub.f32 %v953_v26, %v961_v34 }
 0x788   :  { %v962_v38 = vsub.f32 %v952_v28, %v960_v36 }
 0x789   :  { %v965_v46 = vmul.f32 %v963_v37, %v963_v37 }
 0x78a   :  { %v964_v40 = vmul.f32 %v962_v38, %v962_v38 }
 0x78b   :  { %v969_v41 = vsel %vm30_vm0, %v965_v46, 0.0 }
 0x78c   :  { %v966_v45 = vsel %vm30_vm0, %v964_v40, 0.0 }
 0x78d   :  { %967 = vadd.xlane.f32.xlu0 %v966_v45 }
 0x791   :  { %970 = vadd.xlane.f32.xlu0 %v969_v41 }
 0x81a   :  { %v968_v53 = vpop.xlane.xlu0 %967 }
 0x81b   :  { %v972_v49 = vmul.f32 0.03125, %v968_v53 }
 0x81d   :  { %v974_v54 = vadd.f32 1e-12, %v972_v49 }
 0x81e   :  { %v971_v55 = vpop.xlane.xlu0 %970 }
 0x81f   :  { %3105 = vrsqrt.f32 %v974_v54  ;;  %v973_v56 = vmul.f32 0.03125, %v971_v55 }
 0x821   :  { %v975_v58 = vadd.f32 1e-12, %v973_v56 }
 0x823   :  { %3107 = vrsqrt.f32 %v975_v58 }
 0x829   :  { %v3106_v60 = vpop.eup %3105 }
 0x82a   :  { %v978_v61 = vmul.f32 %v3106_v60, %v962_v38 }
 0x82c   :  { %v984_v0 = vmul.f32 %v983_v59, %v978_v61 }
 0x82d   :  { %v3108_v1 = vpop.eup %3107 }
 0x82e   :  { %v979_v2 = vmul.f32 %v3108_v1, %v963_v37  ;;  %v3413_v4 = vadd.f32 %v989_v63, %v984_v0 }
 0x830   :  { %v985_v5 = vmul.f32 %v983_v59, %v979_v2  ;;  %2806 = vmatprep.mubr.msk.f32.mxu1 %vm30_vm0, %v3413_v4 }
 0x832   :  { %v991_v6 = vadd.f32 %v989_v63, %v985_v5 }
 0x834   :  { %2807 = vmatmul.mubr.msk.f32.vlgmr.msra.gmra.mrb[10].mxu1 %vm30_vm0, %v991_v6 }
 0x907   :  { %v2808_v21 = vpop.f32.mrb[10].mxu1 }
 0x908   :  { %v1074_v22 = vadd.f32 %v2808_v21, %v995_v20  ;;  %v1068_v23 = vpop.f32.mrb[11].mxu1  ;;  %v1211_v21 = vsub.s32 6, %v3259_v27 }
 0x909   :  { %v1069_v24 = vadd.f32 %v1068_v23, %v995_v20 }
 0x90a   :  { %v1080_v25 = vmul.f32 0.044715, %v1074_v22  ;;  %v1078_v39 = vmul.f32 0.5, %v1074_v22  ;;  %v1212_v23 = vrot.slane %v3292_v44, %v1211_v21 }
 0x90b   :  { %v1079_v26 = vmul.f32 0.044715, %v1069_v24  ;;  %v1077_v46 = vmul.f32 0.5, %v1069_v24 }
 0x90c   :  { %v1082_v28 = vmul.f32 %v1080_v25, %v1074_v22 }
 0x90d   :  { %v1081_v30 = vmul.f32 %v1079_v26, %v1069_v24 }
 0x90e   :  { %v1084_v32 = vmul.f32 %v1082_v28, %v1074_v22 }
 0x90f   :  { %v1083_v33 = vmul.f32 %v1081_v30, %v1069_v24 }
 0x910   :  { %v1086_v34 = vadd.f32 %v1084_v32, %v1074_v22  ;;  %v1217_v22 = vsub.s32 7, %v3259_v27 }
 0x911   :  { %v1085_v35 = vadd.f32 %v1083_v33, %v1069_v24 }
 0x912   :  { %v1088_v36 = vmul.f32 0.7978846, %v1086_v34  ;;  %v1218_v30 = vrot.slane %v3292_v44, %v1217_v22 }
 0x913   :  { %v1087_v37 = vmul.f32 0.7978846, %v1085_v35 }
 0x914   :  { %3109 = vtanh.f32 %v1088_v36  ;;  %v3506_v36 = vld [vmem:[%s3717_s4 + $0x8] sm:$0xff] }
 0x915   :  { %3111 = vtanh.f32 %v1087_v37  ;;  %v1244_v44 = vrot.slane %v3506_v36, %v3287_v43 }
 0x91e   :  { %v3110_v38 = vpop.eup %3109 }
 0x91f   :  { %v3112_v40 = vpop.eup %3111  ;;  %v1092_v45 = vadd.f32 1.0, %v3110_v38 }
 0x920   :  { %v1091_v41 = vadd.f32 1.0, %v3112_v40 }
 0x921   :  { %v1094_v50 = vmul.f32 %v1092_v45, %v1078_v39 }
 0x922   :  { %v1093_v47 = vmul.f32 %v1091_v41, %v1077_v46 }
 0x924   :  { %2825 = vmatprep.mubr.msk.f32.mxu0 %vm1099_vm4, %v1093_v47 }
 0x925   :  { %2826 = vmatmul.mubr.msk.f32.vlgmr.msra.gmra.mrb[10].mxu0 %vm1099_vm4, %v1094_v50 }
 0x926   :  { %2851 = vmatprep.mubr.msk.f32.mxu0 %vm3173_vm1, %v3172_v42 }
 0x9f8   :  { %v2827_v52 = vpop.f32.mrb[10].mxu0 }
 0x9f9   :  { %v1178_v53 = vadd.f32 %v2827_v52, %v1098_v48  ;;  %v1172_v49 = vpop.f32.mrb[11].mxu0 }
 0x9fa   :  { %v1173_v54 = vadd.f32 %v1172_v49, %v1098_v48 }
 0x9fb   :  { %v1182_v55 = vadd.f32 %v1178_v53, %v991_v6 }
 0x9fc   :  { %v1181_v56 = vadd.f32 %v1173_v54, %v3413_v4  ;;  %v3463_v4 = vld [vmem:[%s3715_s2 + $0x40] sm:$0xff] }
 0x9fd   :  { %v1186_v58 = vsel %vm30_vm0, %v1182_v55, 0.0  ;;  %v2982_v10 = vpack.c.bf16 %v3468_v9, %v3463_v4 }
 0x9fe   :  { %1187 = vadd.xlane.f32.xlu1 %v1186_v58  ;;  %v1183_v59 = vsel %vm30_vm0, %v1181_v56, 0.0 }
 0x9ff   :  { %1184 = vadd.xlane.f32.xlu0 %v1183_v59  ;;  %2983 = vmatprep.subr.bf16.mxu1 %v2982_v10 }
 0xa00   :  { %2985 = vmatpush3.bf16.msra.mxu1 %v2982_v10 }
 0xa01   :  { %2987 = vmatprep.subr.bf16.mxu1 %v2986_v16 }
 0xa04   :  { %2989 = vmatpush3.bf16.msra.mxu1 %v2986_v16 }
 0xa05   :  { %2839 = vmatprep.subr.mxu1 %v3172_v42 }
 0xa8b   :  { %v1188_v60 = vpop.xlane.xlu1 %1187 }
 0xa8c   :  { %v1190_v61 = vmul.f32 0.03125, %v1188_v60  ;;  %v1185_v63 = vpop.xlane.xlu0 %1184 }
 0xa8d   :  { %v1189_v0 = vmul.f32 0.03125, %v1185_v63 }
 0xa8e   :  { %v1192_v1 = vsub.f32 %v1182_v55, %v1190_v61 }
 0xa8f   :  { %v1191_v2 = vsub.f32 %v1181_v56, %v1189_v0 }
 0xa90   :  { %v1194_v5 = vmul.f32 %v1192_v1, %v1192_v1 }
 0xa91   :  { %v1193_v7 = vmul.f32 %v1191_v2, %v1191_v2 }
 0xa92   :  { %v1198_v8 = vsel %vm30_vm0, %v1194_v5, 0.0 }
 0xa93   :  { %1199 = vadd.xlane.f32.xlu1 %v1198_v8  ;;  %v1195_v6 = vsel %vm30_vm0, %v1193_v7, 0.0 }
 0xa94   :  { %1196 = vadd.xlane.f32.xlu0 %v1195_v6 }
 0xb20   :  { %v1200_v17 = vpop.xlane.xlu1 %1199 }
 0xb21   :  { %v1202_v19 = vmul.f32 0.03125, %v1200_v17  ;;  %v1197_v11 = vpop.xlane.xlu0 %1196 }
 0xb22   :  { %v1201_v12 = vmul.f32 0.03125, %v1197_v11 }
 0xb23   :  { %v1204_v13 = vadd.f32 1e-12, %v1202_v19 }
 0xb24   :  { %v1203_v20 = vadd.f32 1e-12, %v1201_v12 }
 0xb25   :  { %3113 = vrsqrt.f32 %v1204_v13 }
 0xb26   :  { %3115 = vrsqrt.f32 %v1203_v20 }
 0xb2f   :  { %v3114_v24 = vpop.eup %3113 }
 0xb30   :  { %v3116_v25 = vpop.eup %3115  ;;  %v1208_v26 = vmul.f32 %v3114_v24, %v1192_v1 }
 0xb31   :  { %v1207_v28 = vmul.f32 %v3116_v25, %v1191_v2 }
 0xb32   :  { %v1214_v32 = vmul.f32 %v1212_v23, %v1208_v26 }
 0xb33   :  { %v1213_v33 = vmul.f32 %v1212_v23, %v1207_v28 }
 0xb34   :  { %v3495_v35 = vadd.f32 %v1218_v30, %v1214_v32 }
 0xb35   :  { %v3493_v34 = vadd.f32 %v1218_v30, %v1213_v33 }
 0xb37   :  { %2836 = vmatprep.mubr.msk.f32.mxu1 %vm30_vm0, %v3493_v34 }
 0xb38   :  { %2837 = vmatmul.mubr.msk.f32.vlgmr.msra.gmra.mrb[12].mxu1 %vm30_vm0, %v3495_v35 }
 0xb39   :  { %2841 = vmatprep.mubr.msk.f32.mxu1 %vm3173_vm1, %v3172_v42 }
 0xc0b   :  { %v2838_v37 = vpop.f32.mrb[12].mxu1 }
 0xc0c   :  { %v1317_v38 = vpop.f32.mrb[13].mxu1  ;;  %v3516_v45 = vadd.f32 %v2838_v37, %v1244_v44 }
 0xc0d   :  { %v3510_v40 = vadd.f32 %v1317_v38, %v1244_v44 }
 0xc0f   :  { %1492 = vrot.lane.b32.xlu1 %v3510_v40, %s3174_s16  ;;  %1327 = vrot.lane.b32.xlu0 %v3510_v40, %s3175_s17 }
 0xc13   :  { %1490 = vrot.lane.b32.xlu1 %v3510_v40, %s3176_s18  ;;  %1826 = vrot.lane.b32.xlu0 %v3516_v45, %s3174_s16 }
 0xc17   :  { %1661 = vrot.lane.b32.xlu1 %v3516_v45, %s3175_s17 }
 0xc1b   :  { %1824 = vrot.lane.b32.xlu1 %v3516_v45, %s3176_s18 }
 0xc81   :  { %v1493_v46 = vpop.permute.xlu1 %1492  ;;  %v1328_v41 = vpop.permute.xlu0 %1327 }
 0xc82   :  { %2840 = vmatpush3.xpose.msk.msra.mxu1 %vm180_vm2, %v1328_v41  ;;  %2850 = vmatpush3.xpose.msk.msra.mxu0 %vm180_vm2, %v1493_v46 }
 0xc83   :  { %2859 = vmatprep.subr.mxu0 %v3172_v42  ;;  %2844 = vmatprep.subr.mxu1 %v3172_v42 }
 0xc85   :  { %v1491_v39 = vpop.permute.xlu1 %1490  ;;  %2842 = vmatmul.mubr.msk.f32.vlgmr.msra.gmra.mrb[14].mxu1 %vm180_vm2, %v3510_v40  ;;  %v1827_v50 = vpop.permute.xlu0 %1826 }
 0xc86   :  { %2852 = vmatmul.mubr.msk.f32.vlgmr.msra.gmra.mrb[12].mxu0 %vm180_vm2, %v1491_v39  ;;  %2846 = vmatprep.mubr.msk.f32.mxu1 %vm3173_vm1, %v3172_v42 }
 0xc87   :  { %2861 = vmatprep.mubr.msk.f32.mxu0 %vm3173_vm1, %v3172_v42 }
 0xc89   :  { %v1662_v47 = vpop.permute.xlu1 %1661 }
 0xc8a   :  { %2860 = vmatpush3.xpose.msk.msra.mxu0 %vm180_vm2, %v1662_v47 }
 0xc8b   :  { %2869 = vmatprep.subr.mxu0 %v3172_v42 }
 0xc8d   :  { %2862 = vmatmul.mubr.msk.f32.vlgmr.msra.gmra.mrb[14].mxu0 %vm180_vm2, %v3516_v45  ;;  %v1825_v48 = vpop.permute.xlu1 %1824 }
 0xc8e   :  { %2870 = vmatpush3.xpose.msk.msra.mxu0 %vm180_vm2, %v1827_v50  ;;  %2871 = vmatprep.mubr.msk.f32.mxu0 %vm3173_vm1, %v3172_v42 }
 0xc91   :  { %2872 = vmatmul.mubr.msk.f32.vlgmr.msra.gmra.mrb[16].mxu0 %vm180_vm2, %v1825_v48 }
 0xd58   :  { %v1399_v52 = vpop.f32.mrb[14].mxu1 }
 0xd59   :  { %v1400_v53 = vadd.f32 %v1399_v52, %v3335_v57  ;;  %v2843_v49 = vpop.f32.mrb[15].mxu1  ;;  %v1564_v54 = vpop.f32.mrb[12].mxu0 }
 0xd5a   :  { %v1565_v55 = vadd.f32 %v1564_v54, %v3335_v57  ;;  %v2853_v56 = vpop.f32.mrb[13].mxu0 }
 0xd5b   :  { %v1403_v58 = vsel %vm255_vm3, %v1400_v53, -inf  ;;  %v3055_v56 = vpack.i.bf16 %v3468_v9, %v3463_v4 }
 0xd5c   :  { %1404 = vmax.xlane.f32.xlu0 %v1403_v58  ;;  %v1568_v59 = vsel %vm255_vm3, %v1565_v55, -inf  ;;  %v3060_v58 = vpack.i.bf16 %v3480_v15, %v3475_v14 }
 0xd5d   :  { %1569 = vmax.xlane.f32.xlu1 %v1568_v59 }
 0xd60   :  { %v1733_v60 = vpop.f32.mrb[14].mxu0 }
 0xd61   :  { %v1734_v61 = vadd.f32 %v1733_v60, %v3345_v3  ;;  %v2863_v63 = vpop.f32.mrb[15].mxu0 }
 0xd63   :  { %v1737_v0 = vsel %vm255_vm3, %v1734_v61, -inf }
 0xd64   :  { %1738 = vmax.xlane.f32.xlu0 %v1737_v0  ;;  %v1898_v1 = vpop.f32.mrb[16].mxu0 }
 0xd65   :  { %v1899_v2 = vadd.f32 %v1898_v1, %v3345_v3  ;;  %v2873_v5 = vpop.f32.mrb[17].mxu0 }
 0xd67   :  { %v1902_v57 = vsel %vm255_vm3, %v1899_v2, -inf }
 0xd68   :  { %1903 = vmax.xlane.f32.xlu0 %v1902_v57 }
 0xde9   :  { %v1405_v7 = vpop.xlane.xlu0 %1404 }
 0xdea   :  { %v1406_v8 = vsub.f32 %v1400_v53, %v1405_v7  ;;  %v1570_v6 = vpop.xlane.xlu1 %1569 }
 0xdeb   :  { %v1571_v10 = vsub.f32 %v1565_v55, %v1570_v6 }
 0xdec   :  { %v1407_v16 = vmul.f32 1.442695, %v1406_v8 }
 0xded   :  { %v1572_v17 = vmul.f32 1.442695, %v1571_v10 }
 0xdee   :  { %3117 = vpow2.f32 %v1407_v16 }
 0xdef   :  { %3119 = vpow2.f32 %v1572_v17 }
 0xdf1   :  { %v1739_v19 = vpop.xlane.xlu0 %1738 }
 0xdf2   :  { %v1740_v11 = vsub.f32 %v1734_v61, %v1739_v19 }
 0xdf4   :  { %v1741_v12 = vmul.f32 1.442695, %v1740_v11  ;;  %v1997_v11 = vrot.slane %v3506_v36, %v3339_v62 }
 0xdf5   :  { %v1904_v26 = vpop.xlane.xlu0 %1903 }
 0xdf6   :  { %3121 = vpow2.f32 %v1741_v12  ;;  %v1905_v28 = vsub.f32 %v1899_v2, %v1904_v26 }
 0xdf8   :  { %v3118_v13 = vpop.eup %3117  ;;  %v1906_v30 = vmul.f32 1.442695, %v1905_v28 }
 0xdf9   :  { %v3120_v20 = vpop.eup %3119  ;;  %v1409_v3 = vsel %vm255_vm3, %v3118_v13, 0.0 }
 0xdfa   :  { %1410 = vadd.xlane.f32.xlu0 %v1409_v3  ;;  %v1574_v23 = vsel %vm255_vm3, %v3120_v20, 0.0  ;;  %3123 = vpow2.f32 %v1906_v30 }
 0xdfb   :  { %1575 = vadd.xlane.f32.xlu1 %v1574_v23 }
 0xe00   :  { %v3122_v24 = vpop.eup %3121 }
 0xe01   :  { %v1743_v25 = vsel %vm255_vm3, %v3122_v24, 0.0 }
 0xe02   :  { %1744 = vadd.xlane.f32.xlu0 %v1743_v25 }
 0xe04   :  { %v3124_v32 = vpop.eup %3123 }
 0xe05   :  { %v1908_v33 = vsel %vm255_vm3, %v3124_v32, 0.0 }
 0xe0c   :  { %1579 = vrot.lane.b32.xlu1 %v3510_v40, %s3177_s1 }
 0xe10   :  { %1748 = vrot.lane.b32.xlu1 %v3516_v45, %s3178_s21 }
 0xe18   :  { %1414 = vrot.lane.b32.xlu0 %v3510_v40, %s3178_s21 }
 0xe1c   :  { %3056 = vrot.lane.b32.xlu0 %v3055_v56, %s3179_s22  ;;  %v2126_v56 = vrot.slane %v3506_v36, %v3262_v29  ;;  %v2607_v29 = vld [vmem:[%s3716_s3 + $0x40] sm:$0xff] }
 0xe34   :  { %1909 = vadd.xlane.f32.xlu1 %v1908_v33 }
 0xe45   :  { %1913 = vrot.lane.b32.xlu1 %v3516_v45, %s3177_s1 }
 0xe49   :  { %3061 = vrot.lane.b32.xlu1 %v3060_v58, %s3179_s22 }
 0xe87   :  { %v1411_v44 = vpop.xlane.xlu0 %1410 }
 0xe88   :  { %3125 = vrcp.f32 %v1411_v44  ;;  %v1576_v37 = vpop.xlane.xlu1 %1575 }
 0xe89   :  { %3127 = vrcp.f32 %v1576_v37 }
 0xe8c   :  { %v1580_v40 = vpop.permute.xlu1 %1579 }
 0xe8f   :  { %v1745_v38 = vpop.xlane.xlu0 %1744 }
 0xe90   :  { %3129 = vrcp.f32 %v1745_v38  ;;  %v1749_v50 = vpop.permute.xlu1 %1748 }
 0xe92   :  { %v3126_v46 = vpop.eup %3125 }
 0xe93   :  { %v1413_v41 = vmul.f32 %v3126_v46, %v3118_v13  ;;  %v1415_v39 = vpop.permute.xlu0 %1414  ;;  %v3128_v47 = vpop.eup %3127 }
 0xe94   :  { %2845 = vmatpush3.msra.mxu1 %v1415_v39  ;;  %v1578_v45 = vmul.f32 %v3128_v47, %v3120_v20  ;;  %v2604_v47 = vld [vmem:[%s3715_s2 + $0x68] sm:$0xff] }
 0xe95   :  { %2847 = vmatmul.mubr.msk.f32.vlgmr.msra.gmra.mrb[16].mxu1 %vm255_vm3, %v1413_v41  ;;  %2854 = vmatprep.subr.mxu1 %v3172_v42 }
 0xe96   :  { %2855 = vmatpush3.msra.mxu1 %v1580_v40  ;;  %2856 = vmatprep.mubr.msk.f32.mxu1 %vm3173_vm1, %v3172_v42  ;;  %v2602_v40 = vld [vmem:[%s3715_s2 + $0x58] sm:$0xff] }
 0xe97   :  { %2864 = vmatprep.subr.mxu1 %v3172_v42  ;;  %v3057_v59 = vpop.permute.xlu0 %3056 }
 0xe98   :  { %v3059_v60 = vunpack.i.h.bf16 %v3057_v59  ;;  %v3058_v61 = vunpack.i.l.bf16 %v3057_v59 }
 0xe99   :  { %2857 = vmatmul.mubr.msk.f32.vlgmr.msra.gmra.mrb[18].mxu1 %vm255_vm3, %v1578_v45  ;;  %v2606_v45 = vld [vmem:[%s3715_s2 + $0x78] sm:$0xff] }
 0xe9a   :  { %v3130_v48 = vpop.eup %3129  ;;  %2865 = vmatpush3.msra.mxu1 %v1749_v50  ;;  %2866 = vmatprep.mubr.msk.f32.mxu1 %vm3173_vm1, %v3172_v42  ;;  %v2990_v63 = vpack.c.bf16 %v3059_v60, %v3058_v61  ;;  %v3002_v50 = vpack.c.bf16 %v2606_v45, %v2604_v47  ;;  %v2132_v60 = vrot.slane %v3506_v36, %v3268_v31  ;;  %v2608_v31 = vld [vmem:[%s3716_s3 + $0x48] sm:$0xff] }
 0xe9b   :  { %v1747_v52 = vmul.f32 %v3130_v48, %v3122_v24  ;;  %2874 = vmatprep.subr.mxu1 %v3172_v42 }
 0xe9c   :  { %2991 = vmatprep.subr.bf16.mxu0 %v2990_v63 }
 0xe9d   :  { %2867 = vmatmul.mubr.msk.f32.vlgmr.msra.gmra.mrb[20].mxu1 %vm255_vm3, %v1747_v52  ;;  %2993 = vmatpush3.bf16.msra.mxu0 %v2990_v63 }
 0xe9e   :  { %2876 = vmatprep.mubr.msk.f32.mxu1 %vm3173_vm1, %v3172_v42 }
 0xec1   :  { %v1910_v53 = vpop.xlane.xlu1 %1909 }
 0xec2   :  { %3131 = vrcp.f32 %v1910_v53 }
 0xec5   :  { %v1914_v49 = vpop.permute.xlu1 %1913 }
 0xec6   :  { %2875 = vmatpush3.msra.mxu1 %v1914_v49 }
 0xec9   :  { %v3062_v0 = vpop.permute.xlu1 %3061 }
 0xeca   :  { %v3064_v1 = vunpack.i.h.bf16 %v3062_v0  ;;  %v3063_v2 = vunpack.i.l.bf16 %v3062_v0 }
 0xecc   :  { %v3132_v54 = vpop.eup %3131  ;;  %v2994_v57 = vpack.c.bf16 %v3064_v1, %v3063_v2 }
 0xecd   :  { %v1912_v55 = vmul.f32 %v3132_v54, %v3124_v32 }
 0xece   :  { %2995 = vmatprep.subr.bf16.mxu0 %v2994_v57 }
 0xecf   :  { %2877 = vmatmul.mubr.msk.f32.vlgmr.msra.gmra.mrb[22].mxu1 %vm255_vm3, %v1912_v55  ;;  %2997 = vmatpush3.bf16.msra.mxu0 %v2994_v57  ;;  %v3006_v57 = vpack.c.bf16 %v2608_v31, %v2607_v29  ;;  %v2367_v29 = vld [vmem:[%s3718_s5 + $0x20] sm:$0xff]  ;;  %v2369_v31 = vld [vmem:[%s3718_s5 + $0x30] sm:$0xff] }
 0xed1   :  { %3007 = vmatprep.subr.bf16.mxu0 %v3006_v57 }
 0xf68   :  { %v1486_v5 = vpop.f32.mrb[16].mxu1 }
 0xf69   :  { %v2848_v7 = vpop.f32.mrb[17].mxu1 }
 0xf6a   :  { %v2609_v7 = vld [vmem:[%s3716_s3 + $0x50] sm:$0xff] }
 0xf6c   :  { %v1651_v4 = vpop.f32.mrb[18].mxu1 }
 0xf6d   :  { %1656 = vrot.lane.b32.xlu0 %v1651_v4, %s3180_s23  ;;  %v2858_v9 = vpop.f32.mrb[19].mxu1  ;;  %v2610_v4 = vld [vmem:[%s3716_s3 + $0x58] sm:$0xff] }
 0xf6e   :  { %v3010_v9 = vpack.c.bf16 %v2610_v4, %v2609_v7  ;;  %v3026_v7 = vpack.c.bf16 %v2369_v31, %v2367_v29  ;;  %v2366_v4 = vld [vmem:[%s3718_s5 + $0x18] sm:$0xff] }
 0xf70   :  { %v1820_v14 = vpop.f32.mrb[20].mxu1 }
 0xf71   :  { %v2868_v15 = vpop.f32.mrb[21].mxu1 }
 0xf72   :  { %v2612_v15 = vld [vmem:[%s3716_s3 + $0x68] sm:$0xff] }
 0xfa2   :  { %v1985_v8 = vpop.f32.mrb[22].mxu1 }
 0xfa3   :  { %1990 = vrot.lane.b32.xlu1 %v1985_v8, %s3180_s23  ;;  %v2878_v6 = vpop.f32.mrb[23].mxu1 }
 0xfa4   :  { %v2613_v6 = vld [vmem:[%s3716_s3 + $0x70] sm:$0xff] }
 0xfdf   :  { %v1657_v10 = vpop.permute.xlu0 %1656 }
 0xfe0   :  { %v1659_v16 = vsel %vm180_vm2, %v1486_v5, %v1657_v10  ;;  %v2614_v10 = vld [vmem:[%s3716_s3 + $0x78] sm:$0xff] }
 0xfe1   :  { %2887 = vmatprep.mubr.msk.f32.mxu0 %vm30_vm0, %v1659_v16  ;;  %v3018_v16 = vpack.c.bf16 %v2614_v10, %v2613_v6  ;;  %v2370_v10 = vld [vmem:[%s3718_s5 + $0x38] sm:$0xff] }
0x1015   :  { %v1991_v17 = vpop.permute.xlu1 %1990 }
0x1016   :  { %v1993_v19 = vsel %vm180_vm2, %v1820_v14, %v1991_v17  ;;  %v2611_v14 = vld [vmem:[%s3716_s3 + $0x60] sm:$0xff]  ;;  %v2138_v17 = vrot.slane %v3506_v36, %v994_v18 }
0x1017   :  { %2888 = vmatmul.mubr.msk.f32.vlgmr.msra.gmra.mrb[18].mxu0 %vm30_vm0, %v1993_v19  ;;  %v3014_v8 = vpack.c.bf16 %v2612_v15, %v2611_v14  ;;  %v2368_v14 = vld [vmem:[%s3718_s5 + $0x28] sm:$0xff] }
0x1018   :  { %3009 = vmatpush3.bf16.msra.mxu0 %v3006_v57  ;;  %v3181_v57 = vmov 0.0|0.0   ;;  %v3075_v6 = vpack.i.bf16 %v2368_v14, %v2367_v29 }
0x1019   :  { %3011 = vmatprep.subr.bf16.mxu0 %v3010_v9 }
0x101c   :  { %3013 = vmatpush3.bf16.msra.mxu0 %v3010_v9  ;;  %v2364_v9 = vld [vmem:[%s3718_s5 + $0x8] sm:$0xff] }
0x101d   :  { %3015 = vmatprep.subr.bf16.mxu0 %v3014_v8 }
0x1020   :  { %3017 = vmatpush3.bf16.msra.mxu0 %v3014_v8 }
0x1021   :  { %3019 = vmatprep.subr.bf16.mxu0 %v3018_v16 }
0x1024   :  { %3021 = vmatpush3.bf16.msra.mxu0 %v3018_v16  ;;  %v3080_v16 = vpack.i.bf16 %v2370_v10, %v2369_v31 }
0x10ea   :  { %v2889_v12 = vpop.f32.mrb[18].mxu0 }
0x10eb   :  { %v2092_v13 = vadd.f32 %v2889_v12, %v1997_v11  ;;  %v2086_v20 = vpop.f32.mrb[19].mxu0 }
0x10ec   :  { %v2087_v3 = vadd.f32 %v2086_v20, %v1997_v11 }
0x10ed   :  { %v2096_v23 = vadd.f32 %v2092_v13, %v3495_v35 }
0x10ee   :  { %v2095_v24 = vadd.f32 %v2087_v3, %v3493_v34  ;;  %v2600_v34 = vld [vmem:[%s3715_s2 + $0x48] sm:$0xff] }
0x10ef   :  { %v2100_v25 = vsel %vm30_vm0, %v2096_v23, 0.0  ;;  %v2998_v39 = vpack.c.bf16 %v2602_v40, %v2600_v34  ;;  %v2241_v40 = vrot.slane %v3506_v36, %v1097_v51 }
0x10f0   :  { %2101 = vadd.xlane.f32.xlu1 %v2100_v25  ;;  %v2097_v26 = vsel %vm30_vm0, %v2095_v24, 0.0 }
0x10f1   :  { %2098 = vadd.xlane.f32.xlu0 %v2097_v26  ;;  %2999 = vmatprep.subr.bf16.mxu1 %v2998_v39 }
0x10f2   :  { %3001 = vmatpush3.bf16.msra.mxu1 %v2998_v39 }
0x10f3   :  { %3003 = vmatprep.subr.bf16.mxu1 %v3002_v50 }
0x10f6   :  { %3005 = vmatpush3.bf16.msra.mxu1 %v3002_v50 }
0x10f7   :  { %3022 = vmatprep.subr.bf16.mxu1 %v3181_v57 }
0x117d   :  { %v2102_v28 = vpop.xlane.xlu1 %2101 }
0x117e   :  { %v2104_v30 = vmul.f32 0.03125, %v2102_v28  ;;  %v2099_v32 = vpop.xlane.xlu0 %2098 }
0x117f   :  { %v2103_v33 = vmul.f32 0.03125, %v2099_v32 }
0x1180   :  { %v2106_v44 = vsub.f32 %v2096_v23, %v2104_v30 }
0x1181   :  { %v2105_v37 = vsub.f32 %v2095_v24, %v2103_v33 }
0x1182   :  { %v2108_v41 = vmul.f32 %v2106_v44, %v2106_v44 }
0x1183   :  { %v2107_v38 = vmul.f32 %v2105_v37, %v2105_v37 }
0x1184   :  { %v2112_v35 = vsel %vm30_vm0, %v2108_v41, 0.0 }
0x1185   :  { %v2109_v46 = vsel %vm30_vm0, %v2107_v38, 0.0 }
0x1186   :  { %2110 = vadd.xlane.f32.xlu0 %v2109_v46 }
0x118a   :  { %2113 = vadd.xlane.f32.xlu0 %v2112_v35 }
0x1213   :  { %v2111_v48 = vpop.xlane.xlu0 %2110 }
0x1214   :  { %v2115_v52 = vmul.f32 0.03125, %v2111_v48 }
0x1216   :  { %v2117_v53 = vadd.f32 1e-12, %v2115_v52 }
0x1217   :  { %v2114_v49 = vpop.xlane.xlu0 %2113 }
0x1218   :  { %3133 = vrsqrt.f32 %v2117_v53  ;;  %v2116_v54 = vmul.f32 0.03125, %v2114_v49 }
0x121a   :  { %v2118_v55 = vadd.f32 1e-12, %v2116_v54 }
0x121c   :  { %3135 = vrsqrt.f32 %v2118_v55 }
0x1222   :  { %v3134_v58 = vpop.eup %3133 }
0x1223   :  { %v2121_v59 = vmul.f32 %v3134_v58, %v2105_v37 }
0x1225   :  { %v2127_v61 = vmul.f32 %v2126_v56, %v2121_v59 }
0x1226   :  { %v3136_v63 = vpop.eup %3135 }
0x1227   :  { %v2122_v0 = vmul.f32 %v3136_v63, %v2106_v44  ;;  %v2133_v1 = vadd.f32 %v2132_v60, %v2127_v61 }
0x1229   :  { %v2128_v2 = vmul.f32 %v2126_v56, %v2122_v0  ;;  %2898 = vmatprep.mubr.msk.f32.mxu1 %vm30_vm0, %v2133_v1 }
0x122b   :  { %v2134_v5 = vadd.f32 %v2132_v60, %v2128_v2  ;;  %v2365_v2 = vld [vmem:[%s3718_s5 + $0x10] sm:$0xff] }
0x122c   :  { %v3070_v15 = vpack.i.bf16 %v2366_v4, %v2365_v2 }
0x122d   :  { %2899 = vmatmul.mubr.msk.f32.vlgmr.msra.gmra.mrb[24].mxu1 %vm30_vm0, %v2134_v5 }
0x122e   :  { %2928 = vmatprep.mubr.msk.f32.mxu1 %vm3173_vm1, %v3172_v42 }
0x1300   :  { %v2900_v19 = vpop.f32.mrb[24].mxu1 }
0x1301   :  { %v2217_v11 = vadd.f32 %v2900_v19, %v2138_v17  ;;  %v2211_v12 = vpop.f32.mrb[25].mxu1 }
0x1302   :  { %v2212_v13 = vadd.f32 %v2211_v12, %v2138_v17 }
0x1303   :  { %v2223_v20 = vmul.f32 0.044715, %v2217_v11  ;;  %v2221_v41 = vmul.f32 0.5, %v2217_v11 }
0x1304   :  { %v2222_v3 = vmul.f32 0.044715, %v2212_v13  ;;  %v2220_v18 = vmul.f32 0.5, %v2212_v13 }
0x1305   :  { %v2225_v23 = vmul.f32 %v2223_v20, %v2217_v11 }
0x1306   :  { %v2224_v24 = vmul.f32 %v2222_v3, %v2212_v13  ;;  %v2354_v3 = vrot.slane %v3506_v36, %v1211_v21 }
0x1307   :  { %v2227_v25 = vmul.f32 %v2225_v23, %v2217_v11 }
0x1308   :  { %v2226_v26 = vmul.f32 %v2224_v24, %v2212_v13 }
0x1309   :  { %v2229_v28 = vadd.f32 %v2227_v25, %v2217_v11 }
0x130a   :  { %v2228_v30 = vadd.f32 %v2226_v26, %v2212_v13 }
0x130b   :  { %v2231_v32 = vmul.f32 0.7978846, %v2229_v28 }
0x130c   :  { %v2230_v33 = vmul.f32 0.7978846, %v2228_v30 }
0x130d   :  { %3137 = vtanh.f32 %v2231_v32 }
0x130e   :  { %3139 = vtanh.f32 %v2230_v33 }
0x1317   :  { %v3138_v44 = vpop.eup %3137 }
0x1318   :  { %v3140_v37 = vpop.eup %3139  ;;  %v2235_v38 = vadd.f32 1.0, %v3138_v44 }
0x1319   :  { %v2234_v46 = vadd.f32 1.0, %v3140_v37  ;;  %v2360_v37 = vrot.slane %v3506_v36, %v1217_v22 }
0x131a   :  { %v2237_v34 = vmul.f32 %v2235_v38, %v2221_v41 }
0x131b   :  { %v2236_v35 = vmul.f32 %v2234_v46, %v2220_v18 }
0x131d   :  { %2917 = vmatprep.mubr.msk.f32.mxu0 %vm1099_vm4, %v2236_v35 }
0x131e   :  { %2918 = vmatmul.mubr.msk.f32.vlgmr.msra.gmra.mrb[20].mxu0 %vm1099_vm4, %v2237_v34 }
0x13f1   :  { %v2919_v39 = vpop.f32.mrb[20].mxu0 }
0x13f2   :  { %v2320_v47 = vadd.f32 %v2919_v39, %v2241_v40  ;;  %v2314_v45 = vpop.f32.mrb[21].mxu0 }
0x13f3   :  { %v2315_v50 = vadd.f32 %v2314_v45, %v2241_v40 }
0x13f4   :  { %v2324_v48 = vadd.f32 %v2320_v47, %v2134_v5 }
0x13f5   :  { %v2323_v52 = vadd.f32 %v2315_v50, %v2133_v1  ;;  %v2363_v1 = vld [vmem:[%s3718_s5] sm:$0xff] }
0x13f6   :  { %v2328_v53 = vsel %vm30_vm0, %v2324_v48, 0.0  ;;  %v3023_v5 = vpack.c.bf16 %v2365_v2, %v2363_v1  ;;  %v3065_v8 = vpack.i.bf16 %v2364_v9, %v2363_v1 }
0x13f7   :  { %2329 = vadd.xlane.f32.xlu0 %v2328_v53  ;;  %v2325_v49 = vsel %vm30_vm0, %v2323_v52, 0.0 }
0x13f8   :  { %2326 = vadd.xlane.f32.xlu1 %v2325_v49  ;;  %3024 = vmatpush3.bf16.msra.mxu1 %v3023_v5 }
0x13f9   :  { %3025 = vmatprep.subr.bf16.mxu1 %v3181_v57 }
0x13fc   :  { %3027 = vmatpush3.bf16.msra.mxu1 %v3026_v7 }
0x13fd   :  { %3028 = vmatprep.subr.bf16.mxu1 %v3181_v57 }
0x1484   :  { %v2330_v54 = vpop.xlane.xlu0 %2329 }
0x1485   :  { %v2332_v55 = vmul.f32 0.03125, %v2330_v54  ;;  %v2327_v56 = vpop.xlane.xlu1 %2326  ;;  %v3147_v54 = vld [vmem:[%s3719_s6] sm:$0xf] }
0x1486   :  { %v2331_v58 = vmul.f32 0.03125, %v2327_v56 }
0x1487   :  { %v2334_v59 = vsub.f32 %v2324_v48, %v2332_v55  ;;  %v2379_v55 = vrot.slane %v3147_v54, %v3287_v43 }
0x1488   :  { %v2333_v60 = vsub.f32 %v2323_v52, %v2331_v58 }
0x1489   :  { %v2336_v61 = vmul.f32 %v2334_v59, %v2334_v59 }
0x148a   :  { %v2335_v51 = vmul.f32 %v2333_v60, %v2333_v60 }
0x148b   :  { %v2340_v63 = vsel %vm30_vm0, %v2336_v61, 0.0 }
0x148c   :  { %2341 = vadd.xlane.f32.xlu0 %v2340_v63  ;;  %v2337_v0 = vsel %vm30_vm0, %v2335_v51, 0.0 }
0x148d   :  { %2338 = vadd.xlane.f32.xlu1 %v2337_v0 }
0x149e   :  { %3071 = vrot.lane.b32.xlu1 %v3070_v15, %s3175_s17 }
0x14a2   :  { %3066 = vrot.lane.b32.xlu0 %v3065_v8, %s3175_s17  ;;  %3076 = vrot.lane.b32.xlu1 %v3075_v6, %s3175_s17 }
0x14a6   :  { %3081 = vrot.lane.b32.xlu1 %v3080_v16, %s3175_s17 }
0x1519   :  { %v2342_v17 = vpop.xlane.xlu0 %2341 }
0x151a   :  { %v2344_v19 = vmul.f32 0.03125, %v2342_v17  ;;  %v2339_v11 = vpop.xlane.xlu1 %2338 }
0x151b   :  { %v2343_v12 = vmul.f32 0.03125, %v2339_v11 }
0x151c   :  { %v2346_v13 = vadd.f32 1e-12, %v2344_v19 }
0x151d   :  { %v2345_v20 = vadd.f32 1e-12, %v2343_v12  ;;  %v3067_v24 = vpop.permute.xlu0 %3066 }
0x151e   :  { %3141 = vrsqrt.f32 %v2346_v13  ;;  %v3072_v23 = vpop.permute.xlu1 %3071  ;;  %v3069_v30 = vunpack.i.h.bf16 %v3067_v24  ;;  %v3068_v32 = vunpack.i.l.bf16 %v3067_v24 }
0x151f   :  { %3143 = vrsqrt.f32 %v2345_v20  ;;  %v3074_v26 = vunpack.i.h.bf16 %v3072_v23  ;;  %v3073_v28 = vunpack.i.l.bf16 %v3072_v23 }
0x1520   :  { %v2483_v21 = vsel %vm2482_vm5, %v3068_v32, %v3069_v30 }
0x1521   :  { %v2484_v41 = vsel %vm2482_vm5, %v3073_v28, %v3074_v26 }
0x1522   :  { %v3029_v39 = vpack.c.bf16 %v2484_v41, %v2483_v21  ;;  %v3077_v27 = vpop.permute.xlu1 %3076 }
0x1523   :  { %v3079_v22 = vunpack.i.h.bf16 %v3077_v27  ;;  %v3078_v36 = vunpack.i.l.bf16 %v3077_v27 }
0x1525   :  { %v2485_v50 = vsel %vm2482_vm5, %v3078_v36, %v3079_v22 }
0x1526   :  { %v3082_v45 = vpop.permute.xlu1 %3081 }
0x1527   :  { %v3084_v48 = vunpack.i.h.bf16 %v3082_v45  ;;  %v3083_v52 = vunpack.i.l.bf16 %v3082_v45 }
0x1528   :  { %v3142_v25 = vpop.eup %3141 }
0x1529   :  { %v3144_v33 = vpop.eup %3143  ;;  %v2350_v44 = vmul.f32 %v3142_v25, %v2334_v59  ;;  %v2486_v53 = vsel %vm2482_vm5, %v3083_v52, %v3084_v48 }
0x152a   :  { %v2349_v38 = vmul.f32 %v3144_v33, %v2333_v60  ;;  %v3032_v49 = vpack.c.bf16 %v2486_v53, %v2485_v50  ;;  %v2457_v60 = vrot.slane %v3147_v54, %v3339_v62 }
0x152b   :  { %v2356_v18 = vmul.f32 %v2354_v3, %v2350_v44 }
0x152c   :  { %v2355_v46 = vmul.f32 %v2354_v3, %v2349_v38 }
0x152d   :  { %v2362_v35 = vadd.f32 %v2360_v37, %v2356_v18 }
0x152e   :  { %v2361_v34 = vadd.f32 %v2360_v37, %v2355_v46 }
0x152f   :  { %v2372_v40 = vrot.slane %v2362_v35, 7 }
0x1531   :  { %v2375_v47 = vsel %vm2374_vm6, %v2361_v34, %v2372_v40 }
0x1532   :  { %2929 = vmatmul.mubr.msk.f32.vlgmr.msra.gmra.mrb[26].mxu1 %vm30_vm0, %v2375_v47 }
0x1533   :  { %3030 = vmatpush3.bf16.msra.mxu1 %v3029_v39  ;;  %2939 = vmatprep.mubr.msk.f32.mxu1 %vm3173_vm1, %v3172_v42 }
0x1534   :  { %3031 = vmatprep.subr.bf16.mxu1 %v3181_v57 }
0x1537   :  { %3033 = vmatpush3.bf16.msra.mxu1 %v3032_v49 }
0x1605   :  { %v2449_v42 = vpop.f32.mrb[26].mxu1 }
0x1606   :  { %v2450_v56 = vadd.f32 %v2449_v42, %v2379_v55  ;;  %v2930_v58 = vpop.f32.mrb[27].mxu1 }
0x1608   :  { %3145 = vtanh.f32 %v2450_v56 }
0x1612   :  { %v3146_v59 = vpop.eup %3145 }
0x1613   :  { %2940 = vmatmul.mubr.msk.f32.vlgmr.msra.gmra.mrb[28].mxu1 %vm30_vm0, %v3146_v59 }
0x16e6   :  { %v2560_v61 = vpop.f32.mrb[28].mxu1 }
0x16e7   :  { %v2561_v51 = vadd.f32 %v2560_v61, %v2457_v60  ;;  %v2941_v63 = vpop.f32.mrb[29].mxu1 }
0x16e9   :  { %2564 = vst [vmem:[#allocation2] sm:$0x3] %v2561_v51 }
0x16ea   :  { %3159 = shalt.err (!%p3156_p4)
}
0x16eb   :  { %s3160_s30 = scalar_lea.hbm %s3720_s7, 32 }
0x16ec   :  { %p3161_p5 = scmp.ne.s32.totalorder %s3720_s7, %s3160_s30  ;;  %p3164_p6 = scmp.lt.u32.totalorder %s3160_s30, %s3720_s7 }
0x16ee   :  { %p3166_p7 = pnand %p3164_p6, %p3161_p5 }
0x16f0   :  { %3169 = shalt.err (!%p3166_p7)
}
0x16f1   :  { %2574 = dma.vmem_to_hbm [thread:$0]  %s2572_s0, 32, %s3720_s7, [#allocation3]  }
0x16f2   :  { %3170 = dma.done.wait [#allocation3], 32  }
0x16f3   :  { %3171 = vsyncadd [#allocation3], 4294967264 }
0x16f4   :  { %2578 = vsyncpa [#allocation3], 1 }

</bundles_post_ra>
